<compile_context>
chip_gen: v5e
topology: v5e:2x2
jax: 0.10.0
libtpu: 0.0.40
codegen_flags: <defaults>
</compile_context>

<pallas_src>
import functools

import jax
import jax.numpy as jnp
from jax import lax
from jax.experimental import pallas as pl
from jax.experimental.pallas import tpu as pltpu


# ------------------------------ fused kernel --------------------------------

def _fused_layer_kernel(w_ref, r_ref, wqkv_ref, wr_ref, wb_ref, rb_ref,
                        tve_ref, tvb_ref, wo_ref,
                        ln1_g_ref, ln1_b_ref,
                        w1_ref, b1_ref, w2_ref, b2_ref,
                        ln2_g_ref, ln2_b_ref,
                        o_ref, *, n_head, d_head, scale):
    """One batch element: projections -> rel-attention (all heads) -> o_net ->
    residual+LN -> FFN -> residual+LN. Everything stays in VMEM/vregs."""
    x = w_ref[0]                 # (L, d_model)
    rx = r_ref[0]                # (L, d_model)
    L = x.shape[0]
    HD = n_head * d_head

    def lin(a, W):               # W is torch (out, in); contract its `in` axis
        return lax.dot_general(a, W, (((1,), (1,)), ((), ())),
                               preferred_element_type=jnp.float32)

    qkv = lin(x, wqkv_ref[...])  # (L, 3*HD)  == [q | k | v]
    rr = lin(rx, wr_ref[...])    # (L, HD)

    row = lax.broadcasted_iota(jnp.int32, (L, L), 0)
    col = lax.broadcasted_iota(jnp.int32, (L, L), 1)
    causal = col > row
    tve = tve_ref[0]             # (L, L)

    def qk(a, b):                # 'id,jd->ij'
        return lax.dot_general(a, b, (((1,), (1,)), ((), ())),
                               preferred_element_type=jnp.float32)

    heads = []
    for h in range(n_head):                       # static unroll (n_head small)
        q_h = qkv[:, h * d_head:(h + 1) * d_head]
        k_h = qkv[:, HD + h * d_head:HD + (h + 1) * d_head]
        v_h = qkv[:, 2 * HD + h * d_head:2 * HD + (h + 1) * d_head]
        r_h = rr[:, h * d_head:(h + 1) * d_head]
        wb = wb_ref[h]                            # (1, d_head)
        rb = rb_ref[h]
        tv_pos = tvb_ref[h] * tve                 # (L, L)

        ac = qk(q_h + wb, k_h)                    # (L, L)
        bd0 = qk(q_h + rb, r_h)                   # (L, L) before rel-shift

        # Transformer-XL relative shift + tril mask:
        #   bd[i, j] = bd0[i, L-1-(i-j)]  for j <= i, else 0
        bd = jnp.zeros((L, L), jnp.float32)
        for d in range(L):                        # static unroll (L small)
            bd = bd + jnp.where(row - col == d, bd0[:, L - 1 - d:L - d], 0.0)

        s_org = (ac + bd) * scale
        s = s_org + s_org * tv_pos * scale
        s = jnp.where(causal, jnp.float32(-1e9), s)

        m = jnp.max(s, axis=-1, keepdims=True)
        e = jnp.exp(s - m)
        p = e * pl.reciprocal(jnp.sum(e, axis=-1, keepdims=True), approx=True)
        heads.append(jnp.dot(p, v_h, preferred_element_type=jnp.float32))

    attn_vec = jnp.concatenate(heads, axis=-1)    # (L, HD), torch head order
    attn_out = lin(attn_vec, wo_ref[...])         # (L, d_model)

    def layernorm(v, g, b):
        mu = jnp.mean(v, axis=-1, keepdims=True)
        var = jnp.mean((v - mu) ** 2, axis=-1, keepdims=True)
        return (v - mu) * lax.rsqrt(var + 1e-5) * g + b

    x1 = layernorm(x + attn_out, ln1_g_ref[...], ln1_b_ref[...])
    h1 = jnp.maximum(lin(x1, w1_ref[...]) + b1_ref[...], 0.0)
    y = lin(h1, w2_ref[...]) + b2_ref[...]
    o_ref[0] = layernorm(x1 + y, ln2_g_ref[...], ln2_b_ref[...])


# ------------------------------- forward pass -------------------------------

def attention_layer_forward(w, r, w_bias, r_bias, theme_var_encoding,
                            theme_var_bias, params, n_head, d_head):
    B, L, d_model = w.shape
    HD = n_head * d_head
    d_inner = params['W1'].shape[0]
    scale = 1.0 / (d_head ** 0.5)

    tvb_r = theme_var_bias.reshape(n_head, L, L)   # per-head (L, L) bias (view)

    args = (
        w, r,
        params['Wqkv'], params['Wr'],
        w_bias, r_bias,
        theme_var_encoding, tvb_r,
        params['Wo'],
        params['ln1_g'][None, :], params['ln1_b'][None, :],
        params['W1'], params['b1'][None, :],
        params['W2'], params['b2'][None, :],
        params['ln2_g'][None, :], params['ln2_b'][None, :],
    )

    in_specs = [
        pl.BlockSpec((1, L, d_model), lambda b: (b, 0, 0)),       # w
        pl.BlockSpec((1, L, d_model), lambda b: (b, 0, 0)),       # r
        pl.BlockSpec((3 * HD, d_model), lambda b: (0, 0)),        # Wqkv (fused)
        pl.BlockSpec((HD, d_model), lambda b: (0, 0)),            # Wr
        pl.BlockSpec((n_head, 1, d_head), lambda b: (0, 0, 0)),   # w_bias
        pl.BlockSpec((n_head, 1, d_head), lambda b: (0, 0, 0)),   # r_bias
        pl.BlockSpec((1, L, L), lambda b: (b, 0, 0)),             # theme_var_encoding
        pl.BlockSpec((n_head, L, L), lambda b: (0, 0, 0)),        # theme_var_bias
        pl.BlockSpec((d_model, HD), lambda b: (0, 0)),            # Wo
        pl.BlockSpec((1, d_model), lambda b: (0, 0)),             # ln1_g
        pl.BlockSpec((1, d_model), lambda b: (0, 0)),             # ln1_b
        pl.BlockSpec((d_inner, d_model), lambda b: (0, 0)),       # W1
        pl.BlockSpec((1, d_inner), lambda b: (0, 0)),             # b1
        pl.BlockSpec((d_model, d_inner), lambda b: (0, 0)),       # W2
        pl.BlockSpec((1, d_model), lambda b: (0, 0)),             # b2
        pl.BlockSpec((1, d_model), lambda b: (0, 0)),             # ln2_g
        pl.BlockSpec((1, d_model), lambda b: (0, 0)),             # ln2_b
    ]

    out = pl.pallas_call(
        functools.partial(_fused_layer_kernel,
                          n_head=n_head, d_head=d_head, scale=scale),
        out_shape=jax.ShapeDtypeStruct((B, L, d_model), jnp.float32),
        grid=(B,),
        in_specs=in_specs,
        out_specs=pl.BlockSpec((1, L, d_model), lambda b: (b, 0, 0)),
        compiler_params=pltpu.CompilerParams(
            dimension_semantics=("parallel",)),
    )(*args)
    return out


# ----------------------- pure-JAX reference (torch semantics) ----------------

def reference_forward(w, r, w_bias, r_bias, tve, tvb, p, n_head, d_head):
    B, L, d_model = w.shape
    scale = 1.0 / (d_head ** 0.5)
    lin = lambda x, W: jnp.einsum('bld,od->blo', x, W)
    rr, q, k, v = lin(r, p['Wr']), lin(w, p['Wq']), lin(w, p['Wk']), lin(w, p['Wv'])
    split = lambda x: x.reshape(B, L, n_head, d_head).transpose(0, 2, 1, 3)
    q, k, v, rr = map(split, (q, k, v, rr))
    tv = jnp.transpose(jnp.broadcast_to(tve[None], (n_head, B, L, L)), (1, 0, 2, 3))
    ac = jnp.einsum('bnid,bnjd->bnij', q + w_bias, k)
    bd = jnp.einsum('bnid,bnjd->bnij', q + r_bias, rr)
    # exact torch "shift" sequence
    zp = jnp.zeros((B, n_head, L, 1), bd.dtype)
    xp = jnp.concatenate([zp, bd], axis=3).reshape(B, n_head, L + 1, L)
    bd = xp[:, :, 1:].reshape(B, n_head, L, L)
    bd = bd * jnp.tril(jnp.ones((L, L), bd.dtype), 0)[None, None]
    tv_pos = (jnp.broadcast_to(tvb, (B, n_head, L * L)) *
              tv.reshape(B, n_head, -1)).reshape(B, n_head, L, L)
    s_org = (ac + bd) * scale
    s = s_org + s_org * tv_pos * scale
    mask = jnp.triu(jnp.ones((L, L), bool), 1)
    s = jnp.where(mask[None, None], -1e9, s)
    pr = jax.nn.softmax(s, axis=-1)
    av = jnp.einsum('bnij,bnjd->bnid', pr, v)
    av = av.transpose(0, 2, 1, 3).reshape(B, L, n_head * d_head)
    ao = jnp.einsum('blo,do->bld', av, p['Wo'])

    def ln(x, g, b):
        mu = jnp.mean(x, -1, keepdims=True)
        var = jnp.mean((x - mu) ** 2, -1, keepdims=True)
        return (x - mu) / jnp.sqrt(var + 1e-5) * g + b

    x1 = ln(w + ao, p['ln1_g'], p['ln1_b'])
    h = jax.nn.relu(jnp.einsum('bld,id->bli', x1, p['W1']) + p['b1'])
    y = jnp.einsum('bli,di->bld', h, p['W2']) + p['b2']
    return ln(x1 + y, p['ln2_g'], p['ln2_b'])


# ------------------------------------ main -----------------------------------

if __name__ == "__main__":
    n_head, d_model, d_head, d_inner = 2, 32, 8, 64
    B, L = 2, 8
    HD = n_head * d_head

    key = jax.random.PRNGKey(0)
    ks = jax.random.split(key, 16)
    nrm = lambda k, s, sc=0.1: jax.random.normal(k, s, jnp.float32) * sc

    params = dict(
        Wq=nrm(ks[0], (HD, d_model)), Wk=nrm(ks[1], (HD, d_model)),
        Wv=nrm(ks[2], (HD, d_model)), Wr=nrm(ks[3], (HD, d_model)),
        Wo=nrm(ks[4], (d_model, HD)),
        W1=nrm(ks[5], (d_inner, d_model)), b1=nrm(ks[6], (d_inner,)),
        W2=nrm(ks[7], (d_model, d_inner)), b2=nrm(ks[8], (d_model,)),
        ln1_g=jnp.ones((d_model,), jnp.float32), ln1_b=jnp.zeros((d_model,), jnp.float32),
        ln2_g=jnp.ones((d_model,), jnp.float32), ln2_b=jnp.zeros((d_model,), jnp.float32),
    )
    # Fuse q/k/v projection weights ONCE, outside the forward (no per-call .T /
    # concat of weights inside the traced forward).
    params['Wqkv'] = jnp.concatenate([params['Wq'], params['Wk'], params['Wv']],
                                     axis=0)            # (3*HD, d_model)

    w = nrm(ks[9], (B, L, d_model), 1.0)
    r = nrm(ks[10], (B, L, d_model), 1.0)
    w_bias = nrm(ks[11], (n_head, 1, d_head))
    r_bias = nrm(ks[12], (n_head, 1, d_head))
    theme_var_encoding = nrm(ks[13], (B, L, L), 1.0)
    theme_var_bias = nrm(ks[14], (1, n_head, L * L), 1.0)

    out = attention_layer_forward(w, r, w_bias, r_bias, theme_var_encoding,
                                  theme_var_bias, params, n_head, d_head)
    out = jax.block_until_ready(out)

    ref = reference_forward(w, r, w_bias, r_bias, theme_var_encoding,
                            theme_var_bias, params, n_head, d_head)
    err = float(jnp.max(jnp.abs(out - ref)))
    if err > 5e-3:
        raise AssertionError(f"Pallas kernel mismatch vs reference: max abs err {err}")
    print("KERNEL_OK")
</pallas_src>

<mosaic_0001>
module attributes {stable_mosaic.version = 11 : i64} {
  func.func @_fused_layer_kernel(%arg0: i32, %arg1: memref<1x8x32xf32, #tpu.memory_space<vmem>>, %arg2: memref<1x8x32xf32, #tpu.memory_space<vmem>>, %arg3: memref<48x32xf32, #tpu.memory_space<vmem>>, %arg4: memref<16x32xf32, #tpu.memory_space<vmem>>, %arg5: memref<2x1x8xf32, #tpu.memory_space<vmem>>, %arg6: memref<2x1x8xf32, #tpu.memory_space<vmem>>, %arg7: memref<1x8x8xf32, #tpu.memory_space<vmem>>, %arg8: memref<2x8x8xf32, #tpu.memory_space<vmem>>, %arg9: memref<32x16xf32, #tpu.memory_space<vmem>>, %arg10: memref<1x32xf32, #tpu.memory_space<vmem>>, %arg11: memref<1x32xf32, #tpu.memory_space<vmem>>, %arg12: memref<64x32xf32, #tpu.memory_space<vmem>>, %arg13: memref<1x64xf32, #tpu.memory_space<vmem>>, %arg14: memref<32x64xf32, #tpu.memory_space<vmem>>, %arg15: memref<1x32xf32, #tpu.memory_space<vmem>>, %arg16: memref<1x32xf32, #tpu.memory_space<vmem>>, %arg17: memref<1x32xf32, #tpu.memory_space<vmem>>, %arg18: memref<1x8x32xf32, #tpu.memory_space<vmem>>) attributes {dimension_semantics = [#tpu.dimension_semantics<parallel>], iteration_bounds = array<i64: 2>, scalar_prefetch = 0 : i64, scratch_operands = 0 : i64, tpu.core_type = #tpu.core_type<tc>, window_params = [{transform_indices = @transform_0, window_bounds = array<i64: 1, 8, 32>}, {transform_indices = @transform_1, window_bounds = array<i64: 1, 8, 32>}, {pipeline_mode = #tpu.pipeline_mode<synchronous>, transform_indices = @transform_2, window_bounds = array<i64: 48, 32>}, {pipeline_mode = #tpu.pipeline_mode<synchronous>, transform_indices = @transform_3, window_bounds = array<i64: 16, 32>}, {pipeline_mode = #tpu.pipeline_mode<synchronous>, transform_indices = @transform_4, window_bounds = array<i64: 2, 1, 8>}, {pipeline_mode = #tpu.pipeline_mode<synchronous>, transform_indices = @transform_5, window_bounds = array<i64: 2, 1, 8>}, {transform_indices = @transform_6, window_bounds = array<i64: 1, 8, 8>}, {pipeline_mode = #tpu.pipeline_mode<synchronous>, transform_indices = @transform_7, window_bounds = array<i64: 2, 8, 8>}, {pipeline_mode = #tpu.pipeline_mode<synchronous>, transform_indices = @transform_8, window_bounds = array<i64: 32, 16>}, {pipeline_mode = #tpu.pipeline_mode<synchronous>, transform_indices = @transform_9, window_bounds = array<i64: 1, 32>}, {pipeline_mode = #tpu.pipeline_mode<synchronous>, transform_indices = @transform_10, window_bounds = array<i64: 1, 32>}, {pipeline_mode = #tpu.pipeline_mode<synchronous>, transform_indices = @transform_11, window_bounds = array<i64: 64, 32>}, {pipeline_mode = #tpu.pipeline_mode<synchronous>, transform_indices = @transform_12, window_bounds = array<i64: 1, 64>}, {pipeline_mode = #tpu.pipeline_mode<synchronous>, transform_indices = @transform_13, window_bounds = array<i64: 32, 64>}, {pipeline_mode = #tpu.pipeline_mode<synchronous>, transform_indices = @transform_14, window_bounds = array<i64: 1, 32>}, {pipeline_mode = #tpu.pipeline_mode<synchronous>, transform_indices = @transform_15, window_bounds = array<i64: 1, 32>}, {pipeline_mode = #tpu.pipeline_mode<synchronous>, transform_indices = @transform_16, window_bounds = array<i64: 1, 32>}, {transform_indices = @transform_17, window_bounds = array<i64: 1, 8, 32>}]} {
    %c0 = arith.constant 0 : index
    %c0_0 = arith.constant 0 : index
    %c0_1 = arith.constant 0 : index
    %0 = vector.load %arg1[%c0, %c0_0, %c0_1] : memref<1x8x32xf32, #tpu.memory_space<vmem>>, vector<1x8x32xf32>
    %1 = vector.shape_cast %0 : vector<1x8x32xf32> to vector<8x32xf32>
    %c0_2 = arith.constant 0 : index
    %c0_3 = arith.constant 0 : index
    %c0_4 = arith.constant 0 : index
    %2 = vector.load %arg2[%c0_2, %c0_3, %c0_4] : memref<1x8x32xf32, #tpu.memory_space<vmem>>, vector<1x8x32xf32>
    %3 = vector.shape_cast %2 : vector<1x8x32xf32> to vector<8x32xf32>
    %c0_5 = arith.constant 0 : index
    %c0_6 = arith.constant 0 : index
    %4 = vector.load %arg3[%c0_5, %c0_6] : memref<48x32xf32, #tpu.memory_space<vmem>>, vector<48x32xf32>
    %cst = arith.constant dense<0.000000e+00> : vector<8x48xf32>
    %5 = tpu.matmul %1, %4, %cst {dimension_numbers = #tpu.dot_dimension_numbers<[1], [1], [0], [0], [0, 0, 1, 0], [], []>} : vector<8x32xf32>, vector<48x32xf32>, vector<8x48xf32> -> vector<8x48xf32>
    %c0_7 = arith.constant 0 : index
    %c0_8 = arith.constant 0 : index
    %6 = vector.load %arg4[%c0_7, %c0_8] : memref<16x32xf32, #tpu.memory_space<vmem>>, vector<16x32xf32>
    %cst_9 = arith.constant dense<0.000000e+00> : vector<8x16xf32>
    %7 = tpu.matmul %3, %6, %cst_9 {dimension_numbers = #tpu.dot_dimension_numbers<[1], [1], [0], [0], [0, 0, 1, 0], [], []>} : vector<8x32xf32>, vector<16x32xf32>, vector<8x16xf32> -> vector<8x16xf32>
    %8 = tpu.iota {dimensions = array<i32: 0>} : vector<8x8xi32>
    %9 = tpu.iota {dimensions = array<i32: 1>} : vector<8x8xi32>
    %10 = arith.cmpi sgt, %9, %8 : vector<8x8xi32>
    %c0_10 = arith.constant 0 : index
    %c0_11 = arith.constant 0 : index
    %c0_12 = arith.constant 0 : index
    %11 = vector.load %arg7[%c0_10, %c0_11, %c0_12] : memref<1x8x8xf32, #tpu.memory_space<vmem>>, vector<1x8x8xf32>
    %12 = vector.shape_cast %11 : vector<1x8x8xf32> to vector<8x8xf32>
    %13 = vector.extract_strided_slice %5 {offsets = [0, 0], sizes = [8, 8], strides = [1, 1]} : vector<8x48xf32> to vector<8x8xf32>
    %14 = vector.extract_strided_slice %5 {offsets = [0, 16], sizes = [8, 8], strides = [1, 1]} : vector<8x48xf32> to vector<8x8xf32>
    %15 = vector.extract_strided_slice %5 {offsets = [0, 32], sizes = [8, 8], strides = [1, 1]} : vector<8x48xf32> to vector<8x8xf32>
    %16 = vector.extract_strided_slice %7 {offsets = [0, 0], sizes = [8, 8], strides = [1, 1]} : vector<8x16xf32> to vector<8x8xf32>
    %c0_13 = arith.constant 0 : index
    %c0_14 = arith.constant 0 : index
    %c0_15 = arith.constant 0 : index
    %17 = vector.load %arg5[%c0_13, %c0_14, %c0_15] : memref<2x1x8xf32, #tpu.memory_space<vmem>>, vector<1x1x8xf32>
    %18 = vector.shape_cast %17 : vector<1x1x8xf32> to vector<1x8xf32>
    %c0_16 = arith.constant 0 : index
    %c0_17 = arith.constant 0 : index
    %c0_18 = arith.constant 0 : index
    %19 = vector.load %arg6[%c0_16, %c0_17, %c0_18] : memref<2x1x8xf32, #tpu.memory_space<vmem>>, vector<1x1x8xf32>
    %20 = vector.shape_cast %19 : vector<1x1x8xf32> to vector<1x8xf32>
    %c0_19 = arith.constant 0 : index
    %c0_20 = arith.constant 0 : index
    %c0_21 = arith.constant 0 : index
    %21 = vector.load %arg8[%c0_19, %c0_20, %c0_21] : memref<2x8x8xf32, #tpu.memory_space<vmem>>, vector<1x8x8xf32>
    %22 = vector.shape_cast %21 : vector<1x8x8xf32> to vector<8x8xf32>
    %23 = arith.mulf %22, %12 : vector<8x8xf32>
    %24 = vector.broadcast %18 : vector<1x8xf32> to vector<8x8xf32>
    %25 = arith.addf %13, %24 : vector<8x8xf32>
    %cst_22 = arith.constant dense<0.000000e+00> : vector<8x8xf32>
    %26 = tpu.matmul %25, %14, %cst_22 {dimension_numbers = #tpu.dot_dimension_numbers<[1], [1], [0], [0], [0, 0, 1, 0], [], []>} : vector<8x8xf32>, vector<8x8xf32>, vector<8x8xf32> -> vector<8x8xf32>
    %27 = vector.broadcast %20 : vector<1x8xf32> to vector<8x8xf32>
    %28 = arith.addf %13, %27 : vector<8x8xf32>
    %cst_23 = arith.constant dense<0.000000e+00> : vector<8x8xf32>
    %29 = tpu.matmul %28, %16, %cst_23 {dimension_numbers = #tpu.dot_dimension_numbers<[1], [1], [0], [0], [0, 0, 1, 0], [], []>} : vector<8x8xf32>, vector<8x8xf32>, vector<8x8xf32> -> vector<8x8xf32>
    %cst_24 = arith.constant 0.000000e+00 : f32
    %30 = vector.broadcast %cst_24 : f32 to vector<8x8xf32>
    %31 = arith.subi %8, %9 : vector<8x8xi32>
    %c0_i32 = arith.constant 0 : i32
    %32 = vector.broadcast %c0_i32 : i32 to vector<8x8xi32>
    %33 = arith.cmpi eq, %31, %32 : vector<8x8xi32>
    %34 = vector.extract_strided_slice %29 {offsets = [0, 7], sizes = [8, 1], strides = [1, 1]} : vector<8x8xf32> to vector<8x1xf32>
    %cst_25 = arith.constant 0.000000e+00 : f32
    %35 = vector.shape_cast %34 : vector<8x1xf32> to vector<8x1xf32>
    %36 = vector.broadcast %35 : vector<8x1xf32> to vector<8x8xf32>
    %37 = vector.broadcast %cst_25 : f32 to vector<8x8xf32>
    %38 = arith.select %33, %36, %37 : vector<8x8xi1>, vector<8x8xf32>
    %39 = arith.addf %30, %38 : vector<8x8xf32>
    %40 = arith.subi %8, %9 : vector<8x8xi32>
    %c1_i32 = arith.constant 1 : i32
    %41 = vector.broadcast %c1_i32 : i32 to vector<8x8xi32>
    %42 = arith.cmpi eq, %40, %41 : vector<8x8xi32>
    %43 = vector.extract_strided_slice %29 {offsets = [0, 6], sizes = [8, 1], strides = [1, 1]} : vector<8x8xf32> to vector<8x1xf32>
    %cst_26 = arith.constant 0.000000e+00 : f32
    %44 = vector.shape_cast %43 : vector<8x1xf32> to vector<8x1xf32>
    %45 = vector.broadcast %44 : vector<8x1xf32> to vector<8x8xf32>
    %46 = vector.broadcast %cst_26 : f32 to vector<8x8xf32>
    %47 = arith.select %42, %45, %46 : vector<8x8xi1>, vector<8x8xf32>
    %48 = arith.addf %39, %47 : vector<8x8xf32>
    %49 = arith.subi %8, %9 : vector<8x8xi32>
    %c2_i32 = arith.constant 2 : i32
    %50 = vector.broadcast %c2_i32 : i32 to vector<8x8xi32>
    %51 = arith.cmpi eq, %49, %50 : vector<8x8xi32>
    %52 = vector.extract_strided_slice %29 {offsets = [0, 5], sizes = [8, 1], strides = [1, 1]} : vector<8x8xf32> to vector<8x1xf32>
    %cst_27 = arith.constant 0.000000e+00 : f32
    %53 = vector.shape_cast %52 : vector<8x1xf32> to vector<8x1xf32>
    %54 = vector.broadcast %53 : vector<8x1xf32> to vector<8x8xf32>
    %55 = vector.broadcast %cst_27 : f32 to vector<8x8xf32>
    %56 = arith.select %51, %54, %55 : vector<8x8xi1>, vector<8x8xf32>
    %57 = arith.addf %48, %56 : vector<8x8xf32>
    %58 = arith.subi %8, %9 : vector<8x8xi32>
    %c3_i32 = arith.constant 3 : i32
    %59 = vector.broadcast %c3_i32 : i32 to vector<8x8xi32>
    %60 = arith.cmpi eq, %58, %59 : vector<8x8xi32>
    %61 = vector.extract_strided_slice %29 {offsets = [0, 4], sizes = [8, 1], strides = [1, 1]} : vector<8x8xf32> to vector<8x1xf32>
    %cst_28 = arith.constant 0.000000e+00 : f32
    %62 = vector.shape_cast %61 : vector<8x1xf32> to vector<8x1xf32>
    %63 = vector.broadcast %62 : vector<8x1xf32> to vector<8x8xf32>
    %64 = vector.broadcast %cst_28 : f32 to vector<8x8xf32>
    %65 = arith.select %60, %63, %64 : vector<8x8xi1>, vector<8x8xf32>
    %66 = arith.addf %57, %65 : vector<8x8xf32>
    %67 = arith.subi %8, %9 : vector<8x8xi32>
    %c4_i32 = arith.constant 4 : i32
    %68 = vector.broadcast %c4_i32 : i32 to vector<8x8xi32>
    %69 = arith.cmpi eq, %67, %68 : vector<8x8xi32>
    %70 = vector.extract_strided_slice %29 {offsets = [0, 3], sizes = [8, 1], strides = [1, 1]} : vector<8x8xf32> to vector<8x1xf32>
    %cst_29 = arith.constant 0.000000e+00 : f32
    %71 = vector.shape_cast %70 : vector<8x1xf32> to vector<8x1xf32>
    %72 = vector.broadcast %71 : vector<8x1xf32> to vector<8x8xf32>
    %73 = vector.broadcast %cst_29 : f32 to vector<8x8xf32>
    %74 = arith.select %69, %72, %73 : vector<8x8xi1>, vector<8x8xf32>
    %75 = arith.addf %66, %74 : vector<8x8xf32>
    %76 = arith.subi %8, %9 : vector<8x8xi32>
    %c5_i32 = arith.constant 5 : i32
    %77 = vector.broadcast %c5_i32 : i32 to vector<8x8xi32>
    %78 = arith.cmpi eq, %76, %77 : vector<8x8xi32>
    %79 = vector.extract_strided_slice %29 {offsets = [0, 2], sizes = [8, 1], strides = [1, 1]} : vector<8x8xf32> to vector<8x1xf32>
    %cst_30 = arith.constant 0.000000e+00 : f32
    %80 = vector.shape_cast %79 : vector<8x1xf32> to vector<8x1xf32>
    %81 = vector.broadcast %80 : vector<8x1xf32> to vector<8x8xf32>
    %82 = vector.broadcast %cst_30 : f32 to vector<8x8xf32>
    %83 = arith.select %78, %81, %82 : vector<8x8xi1>, vector<8x8xf32>
    %84 = arith.addf %75, %83 : vector<8x8xf32>
    %85 = arith.subi %8, %9 : vector<8x8xi32>
    %c6_i32 = arith.constant 6 : i32
    %86 = vector.broadcast %c6_i32 : i32 to vector<8x8xi32>
    %87 = arith.cmpi eq, %85, %86 : vector<8x8xi32>
    %88 = vector.extract_strided_slice %29 {offsets = [0, 1], sizes = [8, 1], strides = [1, 1]} : vector<8x8xf32> to vector<8x1xf32>
    %cst_31 = arith.constant 0.000000e+00 : f32
    %89 = vector.shape_cast %88 : vector<8x1xf32> to vector<8x1xf32>
    %90 = vector.broadcast %89 : vector<8x1xf32> to vector<8x8xf32>
    %91 = vector.broadcast %cst_31 : f32 to vector<8x8xf32>
    %92 = arith.select %87, %90, %91 : vector<8x8xi1>, vector<8x8xf32>
    %93 = arith.addf %84, %92 : vector<8x8xf32>
    %94 = arith.subi %8, %9 : vector<8x8xi32>
    %c7_i32 = arith.constant 7 : i32
    %95 = vector.broadcast %c7_i32 : i32 to vector<8x8xi32>
    %96 = arith.cmpi eq, %94, %95 : vector<8x8xi32>
    %97 = vector.extract_strided_slice %29 {offsets = [0, 0], sizes = [8, 1], strides = [1, 1]} : vector<8x8xf32> to vector<8x1xf32>
    %cst_32 = arith.constant 0.000000e+00 : f32
    %98 = vector.shape_cast %97 : vector<8x1xf32> to vector<8x1xf32>
    %99 = vector.broadcast %98 : vector<8x1xf32> to vector<8x8xf32>
    %100 = vector.broadcast %cst_32 : f32 to vector<8x8xf32>
    %101 = arith.select %96, %99, %100 : vector<8x8xi1>, vector<8x8xf32>
    %102 = arith.addf %93, %101 : vector<8x8xf32>
    %103 = arith.addf %26, %102 : vector<8x8xf32>
    %cst_33 = arith.constant 0.353553385 : f32
    %104 = vector.broadcast %cst_33 : f32 to vector<8x8xf32>
    %105 = arith.mulf %103, %104 : vector<8x8xf32>
    %106 = arith.mulf %105, %23 : vector<8x8xf32>
    %cst_34 = arith.constant 0.353553385 : f32
    %107 = vector.broadcast %cst_34 : f32 to vector<8x8xf32>
    %108 = arith.mulf %106, %107 : vector<8x8xf32>
    %109 = arith.addf %105, %108 : vector<8x8xf32>
    %cst_35 = arith.constant -1.000000e+09 : f32
    %110 = vector.broadcast %cst_35 : f32 to vector<8x8xf32>
    %111 = arith.select %10, %110, %109 : vector<8x8xi1>, vector<8x8xf32>
    %cst_36 = arith.constant dense<0xFF800000> : vector<8xf32>
    %112 = vector.multi_reduction <maximumf>, %111, %cst_36 [1] : vector<8x8xf32> to vector<8xf32>
    %113 = vector.shape_cast %112 : vector<8xf32> to vector<8x1xf32>
    %114 = vector.broadcast %113 : vector<8x1xf32> to vector<8x8xf32>
    %115 = arith.subf %111, %114 : vector<8x8xf32>
    %116 = math.exp %115 : vector<8x8xf32>
    %cst_37 = arith.constant dense<0.000000e+00> : vector<8xf32>
    %117 = vector.multi_reduction <add>, %116, %cst_37 [1] : vector<8x8xf32> to vector<8xf32>
    %118 = vector.shape_cast %117 : vector<8xf32> to vector<8x1xf32>
    %119 = tpu.reciprocal %118 {approx = true} : vector<8x1xf32> -> vector<8x1xf32>
    %120 = vector.broadcast %119 : vector<8x1xf32> to vector<8x8xf32>
    %121 = arith.mulf %116, %120 : vector<8x8xf32>
    %cst_38 = arith.constant dense<0.000000e+00> : vector<8x8xf32>
    %122 = tpu.matmul %121, %15, %cst_38 {dimension_numbers = #tpu.dot_dimension_numbers<[1], [0], [0], [1], [0, 0, 1, 1], [], []>} : vector<8x8xf32>, vector<8x8xf32>, vector<8x8xf32> -> vector<8x8xf32>
    %123 = vector.extract_strided_slice %5 {offsets = [0, 8], sizes = [8, 8], strides = [1, 1]} : vector<8x48xf32> to vector<8x8xf32>
    %124 = vector.extract_strided_slice %5 {offsets = [0, 24], sizes = [8, 8], strides = [1, 1]} : vector<8x48xf32> to vector<8x8xf32>
    %125 = vector.extract_strided_slice %5 {offsets = [0, 40], sizes = [8, 8], strides = [1, 1]} : vector<8x48xf32> to vector<8x8xf32>
    %126 = vector.extract_strided_slice %7 {offsets = [0, 8], sizes = [8, 8], strides = [1, 1]} : vector<8x16xf32> to vector<8x8xf32>
    %c1 = arith.constant 1 : index
    %c0_39 = arith.constant 0 : index
    %c0_40 = arith.constant 0 : index
    %127 = vector.load %arg5[%c1, %c0_39, %c0_40] : memref<2x1x8xf32, #tpu.memory_space<vmem>>, vector<1x1x8xf32>
    %128 = vector.shape_cast %127 : vector<1x1x8xf32> to vector<1x8xf32>
    %c1_41 = arith.constant 1 : index
    %c0_42 = arith.constant 0 : index
    %c0_43 = arith.constant 0 : index
    %129 = vector.load %arg6[%c1_41, %c0_42, %c0_43] : memref<2x1x8xf32, #tpu.memory_space<vmem>>, vector<1x1x8xf32>
    %130 = vector.shape_cast %129 : vector<1x1x8xf32> to vector<1x8xf32>
    %c1_44 = arith.constant 1 : index
    %c0_45 = arith.constant 0 : index
    %c0_46 = arith.constant 0 : index
    %131 = vector.load %arg8[%c1_44, %c0_45, %c0_46] : memref<2x8x8xf32, #tpu.memory_space<vmem>>, vector<1x8x8xf32>
    %132 = vector.shape_cast %131 : vector<1x8x8xf32> to vector<8x8xf32>
    %133 = arith.mulf %132, %12 : vector<8x8xf32>
    %134 = vector.broadcast %128 : vector<1x8xf32> to vector<8x8xf32>
    %135 = arith.addf %123, %134 : vector<8x8xf32>
    %cst_47 = arith.constant dense<0.000000e+00> : vector<8x8xf32>
    %136 = tpu.matmul %135, %124, %cst_47 {dimension_numbers = #tpu.dot_dimension_numbers<[1], [1], [0], [0], [0, 0, 1, 0], [], []>} : vector<8x8xf32>, vector<8x8xf32>, vector<8x8xf32> -> vector<8x8xf32>
    %137 = vector.broadcast %130 : vector<1x8xf32> to vector<8x8xf32>
    %138 = arith.addf %123, %137 : vector<8x8xf32>
    %cst_48 = arith.constant dense<0.000000e+00> : vector<8x8xf32>
    %139 = tpu.matmul %138, %126, %cst_48 {dimension_numbers = #tpu.dot_dimension_numbers<[1], [1], [0], [0], [0, 0, 1, 0], [], []>} : vector<8x8xf32>, vector<8x8xf32>, vector<8x8xf32> -> vector<8x8xf32>
    %cst_49 = arith.constant 0.000000e+00 : f32
    %140 = vector.broadcast %cst_49 : f32 to vector<8x8xf32>
    %141 = arith.subi %8, %9 : vector<8x8xi32>
    %c0_i32_50 = arith.constant 0 : i32
    %142 = vector.broadcast %c0_i32_50 : i32 to vector<8x8xi32>
    %143 = arith.cmpi eq, %141, %142 : vector<8x8xi32>
    %144 = vector.extract_strided_slice %139 {offsets = [0, 7], sizes = [8, 1], strides = [1, 1]} : vector<8x8xf32> to vector<8x1xf32>
    %cst_51 = arith.constant 0.000000e+00 : f32
    %145 = vector.shape_cast %144 : vector<8x1xf32> to vector<8x1xf32>
    %146 = vector.broadcast %145 : vector<8x1xf32> to vector<8x8xf32>
    %147 = vector.broadcast %cst_51 : f32 to vector<8x8xf32>
    %148 = arith.select %143, %146, %147 : vector<8x8xi1>, vector<8x8xf32>
    %149 = arith.addf %140, %148 : vector<8x8xf32>
    %150 = arith.subi %8, %9 : vector<8x8xi32>
    %c1_i32_52 = arith.constant 1 : i32
    %151 = vector.broadcast %c1_i32_52 : i32 to vector<8x8xi32>
    %152 = arith.cmpi eq, %150, %151 : vector<8x8xi32>
    %153 = vector.extract_strided_slice %139 {offsets = [0, 6], sizes = [8, 1], strides = [1, 1]} : vector<8x8xf32> to vector<8x1xf32>
    %cst_53 = arith.constant 0.000000e+00 : f32
    %154 = vector.shape_cast %153 : vector<8x1xf32> to vector<8x1xf32>
    %155 = vector.broadcast %154 : vector<8x1xf32> to vector<8x8xf32>
    %156 = vector.broadcast %cst_53 : f32 to vector<8x8xf32>
    %157 = arith.select %152, %155, %156 : vector<8x8xi1>, vector<8x8xf32>
    %158 = arith.addf %149, %157 : vector<8x8xf32>
    %159 = arith.subi %8, %9 : vector<8x8xi32>
    %c2_i32_54 = arith.constant 2 : i32
    %160 = vector.broadcast %c2_i32_54 : i32 to vector<8x8xi32>
    %161 = arith.cmpi eq, %159, %160 : vector<8x8xi32>
    %162 = vector.extract_strided_slice %139 {offsets = [0, 5], sizes = [8, 1], strides = [1, 1]} : vector<8x8xf32> to vector<8x1xf32>
    %cst_55 = arith.constant 0.000000e+00 : f32
    %163 = vector.shape_cast %162 : vector<8x1xf32> to vector<8x1xf32>
    %164 = vector.broadcast %163 : vector<8x1xf32> to vector<8x8xf32>
    %165 = vector.broadcast %cst_55 : f32 to vector<8x8xf32>
    %166 = arith.select %161, %164, %165 : vector<8x8xi1>, vector<8x8xf32>
    %167 = arith.addf %158, %166 : vector<8x8xf32>
    %168 = arith.subi %8, %9 : vector<8x8xi32>
    %c3_i32_56 = arith.constant 3 : i32
    %169 = vector.broadcast %c3_i32_56 : i32 to vector<8x8xi32>
    %170 = arith.cmpi eq, %168, %169 : vector<8x8xi32>
    %171 = vector.extract_strided_slice %139 {offsets = [0, 4], sizes = [8, 1], strides = [1, 1]} : vector<8x8xf32> to vector<8x1xf32>
    %cst_57 = arith.constant 0.000000e+00 : f32
    %172 = vector.shape_cast %171 : vector<8x1xf32> to vector<8x1xf32>
    %173 = vector.broadcast %172 : vector<8x1xf32> to vector<8x8xf32>
    %174 = vector.broadcast %cst_57 : f32 to vector<8x8xf32>
    %175 = arith.select %170, %173, %174 : vector<8x8xi1>, vector<8x8xf32>
    %176 = arith.addf %167, %175 : vector<8x8xf32>
    %177 = arith.subi %8, %9 : vector<8x8xi32>
    %c4_i32_58 = arith.constant 4 : i32
    %178 = vector.broadcast %c4_i32_58 : i32 to vector<8x8xi32>
    %179 = arith.cmpi eq, %177, %178 : vector<8x8xi32>
    %180 = vector.extract_strided_slice %139 {offsets = [0, 3], sizes = [8, 1], strides = [1, 1]} : vector<8x8xf32> to vector<8x1xf32>
    %cst_59 = arith.constant 0.000000e+00 : f32
    %181 = vector.shape_cast %180 : vector<8x1xf32> to vector<8x1xf32>
    %182 = vector.broadcast %181 : vector<8x1xf32> to vector<8x8xf32>
    %183 = vector.broadcast %cst_59 : f32 to vector<8x8xf32>
    %184 = arith.select %179, %182, %183 : vector<8x8xi1>, vector<8x8xf32>
    %185 = arith.addf %176, %184 : vector<8x8xf32>
    %186 = arith.subi %8, %9 : vector<8x8xi32>
    %c5_i32_60 = arith.constant 5 : i32
    %187 = vector.broadcast %c5_i32_60 : i32 to vector<8x8xi32>
    %188 = arith.cmpi eq, %186, %187 : vector<8x8xi32>
    %189 = vector.extract_strided_slice %139 {offsets = [0, 2], sizes = [8, 1], strides = [1, 1]} : vector<8x8xf32> to vector<8x1xf32>
    %cst_61 = arith.constant 0.000000e+00 : f32
    %190 = vector.shape_cast %189 : vector<8x1xf32> to vector<8x1xf32>
    %191 = vector.broadcast %190 : vector<8x1xf32> to vector<8x8xf32>
    %192 = vector.broadcast %cst_61 : f32 to vector<8x8xf32>
    %193 = arith.select %188, %191, %192 : vector<8x8xi1>, vector<8x8xf32>
    %194 = arith.addf %185, %193 : vector<8x8xf32>
    %195 = arith.subi %8, %9 : vector<8x8xi32>
    %c6_i32_62 = arith.constant 6 : i32
    %196 = vector.broadcast %c6_i32_62 : i32 to vector<8x8xi32>
    %197 = arith.cmpi eq, %195, %196 : vector<8x8xi32>
    %198 = vector.extract_strided_slice %139 {offsets = [0, 1], sizes = [8, 1], strides = [1, 1]} : vector<8x8xf32> to vector<8x1xf32>
    %cst_63 = arith.constant 0.000000e+00 : f32
    %199 = vector.shape_cast %198 : vector<8x1xf32> to vector<8x1xf32>
    %200 = vector.broadcast %199 : vector<8x1xf32> to vector<8x8xf32>
    %201 = vector.broadcast %cst_63 : f32 to vector<8x8xf32>
    %202 = arith.select %197, %200, %201 : vector<8x8xi1>, vector<8x8xf32>
    %203 = arith.addf %194, %202 : vector<8x8xf32>
    %204 = arith.subi %8, %9 : vector<8x8xi32>
    %c7_i32_64 = arith.constant 7 : i32
    %205 = vector.broadcast %c7_i32_64 : i32 to vector<8x8xi32>
    %206 = arith.cmpi eq, %204, %205 : vector<8x8xi32>
    %207 = vector.extract_strided_slice %139 {offsets = [0, 0], sizes = [8, 1], strides = [1, 1]} : vector<8x8xf32> to vector<8x1xf32>
    %cst_65 = arith.constant 0.000000e+00 : f32
    %208 = vector.shape_cast %207 : vector<8x1xf32> to vector<8x1xf32>
    %209 = vector.broadcast %208 : vector<8x1xf32> to vector<8x8xf32>
    %210 = vector.broadcast %cst_65 : f32 to vector<8x8xf32>
    %211 = arith.select %206, %209, %210 : vector<8x8xi1>, vector<8x8xf32>
    %212 = arith.addf %203, %211 : vector<8x8xf32>
    %213 = arith.addf %136, %212 : vector<8x8xf32>
    %cst_66 = arith.constant 0.353553385 : f32
    %214 = vector.broadcast %cst_66 : f32 to vector<8x8xf32>
    %215 = arith.mulf %213, %214 : vector<8x8xf32>
    %216 = arith.mulf %215, %133 : vector<8x8xf32>
    %cst_67 = arith.constant 0.353553385 : f32
    %217 = vector.broadcast %cst_67 : f32 to vector<8x8xf32>
    %218 = arith.mulf %216, %217 : vector<8x8xf32>
    %219 = arith.addf %215, %218 : vector<8x8xf32>
    %cst_68 = arith.constant -1.000000e+09 : f32
    %220 = vector.broadcast %cst_68 : f32 to vector<8x8xf32>
    %221 = arith.select %10, %220, %219 : vector<8x8xi1>, vector<8x8xf32>
    %cst_69 = arith.constant dense<0xFF800000> : vector<8xf32>
    %222 = vector.multi_reduction <maximumf>, %221, %cst_69 [1] : vector<8x8xf32> to vector<8xf32>
    %223 = vector.shape_cast %222 : vector<8xf32> to vector<8x1xf32>
    %224 = vector.broadcast %223 : vector<8x1xf32> to vector<8x8xf32>
    %225 = arith.subf %221, %224 : vector<8x8xf32>
    %226 = math.exp %225 : vector<8x8xf32>
    %cst_70 = arith.constant dense<0.000000e+00> : vector<8xf32>
    %227 = vector.multi_reduction <add>, %226, %cst_70 [1] : vector<8x8xf32> to vector<8xf32>
    %228 = vector.shape_cast %227 : vector<8xf32> to vector<8x1xf32>
    %229 = tpu.reciprocal %228 {approx = true} : vector<8x1xf32> -> vector<8x1xf32>
    %230 = vector.broadcast %229 : vector<8x1xf32> to vector<8x8xf32>
    %231 = arith.mulf %226, %230 : vector<8x8xf32>
    %cst_71 = arith.constant dense<0.000000e+00> : vector<8x8xf32>
    %232 = tpu.matmul %231, %125, %cst_71 {dimension_numbers = #tpu.dot_dimension_numbers<[1], [0], [0], [1], [0, 0, 1, 1], [], []>} : vector<8x8xf32>, vector<8x8xf32>, vector<8x8xf32> -> vector<8x8xf32>
    %233 = tpu.concatenate %122, %232 in 1 : vector<8x8xf32>, vector<8x8xf32> -> vector<8x16xf32>
    %c0_72 = arith.constant 0 : index
    %c0_73 = arith.constant 0 : index
    %234 = vector.load %arg9[%c0_72, %c0_73] : memref<32x16xf32, #tpu.memory_space<vmem>>, vector<32x16xf32>
    %cst_74 = arith.constant dense<0.000000e+00> : vector<8x32xf32>
    %235 = tpu.matmul %233, %234, %cst_74 {dimension_numbers = #tpu.dot_dimension_numbers<[1], [1], [0], [0], [0, 0, 1, 0], [], []>} : vector<8x16xf32>, vector<32x16xf32>, vector<8x32xf32> -> vector<8x32xf32>
    %236 = arith.addf %1, %235 : vector<8x32xf32>
    %c0_75 = arith.constant 0 : index
    %c0_76 = arith.constant 0 : index
    %237 = vector.load %arg10[%c0_75, %c0_76] : memref<1x32xf32, #tpu.memory_space<vmem>>, vector<1x32xf32>
    %c0_77 = arith.constant 0 : index
    %c0_78 = arith.constant 0 : index
    %238 = vector.load %arg11[%c0_77, %c0_78] : memref<1x32xf32, #tpu.memory_space<vmem>>, vector<1x32xf32>
    %cst_79 = arith.constant dense<0.000000e+00> : vector<8xf32>
    %239 = vector.multi_reduction <add>, %236, %cst_79 [1] : vector<8x32xf32> to vector<8xf32>
    %240 = vector.shape_cast %239 : vector<8xf32> to vector<8x1xf32>
    %cst_80 = arith.constant 3.200000e+01 : f32
    %241 = vector.broadcast %cst_80 : f32 to vector<8x1xf32>
    %242 = arith.divf %240, %241 : vector<8x1xf32>
    %243 = vector.broadcast %242 : vector<8x1xf32> to vector<8x32xf32>
    %244 = arith.subf %236, %243 : vector<8x32xf32>
    %245 = arith.mulf %244, %244 : vector<8x32xf32>
    %cst_81 = arith.constant dense<0.000000e+00> : vector<8xf32>
    %246 = vector.multi_reduction <add>, %245, %cst_81 [1] : vector<8x32xf32> to vector<8xf32>
    %247 = vector.shape_cast %246 : vector<8xf32> to vector<8x1xf32>
    %cst_82 = arith.constant 3.200000e+01 : f32
    %248 = vector.broadcast %cst_82 : f32 to vector<8x1xf32>
    %249 = arith.divf %247, %248 : vector<8x1xf32>
    %250 = vector.broadcast %242 : vector<8x1xf32> to vector<8x32xf32>
    %251 = arith.subf %236, %250 : vector<8x32xf32>
    %cst_83 = arith.constant 9.99999974E-6 : f32
    %252 = vector.broadcast %cst_83 : f32 to vector<8x1xf32>
    %253 = arith.addf %249, %252 : vector<8x1xf32>
    %254 = math.rsqrt %253 : vector<8x1xf32>
    %255 = vector.broadcast %254 : vector<8x1xf32> to vector<8x32xf32>
    %256 = arith.mulf %251, %255 : vector<8x32xf32>
    %257 = vector.broadcast %237 : vector<1x32xf32> to vector<8x32xf32>
    %258 = arith.mulf %256, %257 : vector<8x32xf32>
    %259 = vector.broadcast %238 : vector<1x32xf32> to vector<8x32xf32>
    %260 = arith.addf %258, %259 : vector<8x32xf32>
    %c0_84 = arith.constant 0 : index
    %c0_85 = arith.constant 0 : index
    %261 = vector.load %arg12[%c0_84, %c0_85] : memref<64x32xf32, #tpu.memory_space<vmem>>, vector<64x32xf32>
    %cst_86 = arith.constant dense<0.000000e+00> : vector<8x64xf32>
    %262 = tpu.matmul %260, %261, %cst_86 {dimension_numbers = #tpu.dot_dimension_numbers<[1], [1], [0], [0], [0, 0, 1, 0], [], []>} : vector<8x32xf32>, vector<64x32xf32>, vector<8x64xf32> -> vector<8x64xf32>
    %c0_87 = arith.constant 0 : index
    %c0_88 = arith.constant 0 : index
    %263 = vector.load %arg13[%c0_87, %c0_88] : memref<1x64xf32, #tpu.memory_space<vmem>>, vector<1x64xf32>
    %264 = vector.broadcast %263 : vector<1x64xf32> to vector<8x64xf32>
    %265 = arith.addf %262, %264 : vector<8x64xf32>
    %cst_89 = arith.constant 0.000000e+00 : f32
    %266 = vector.broadcast %cst_89 : f32 to vector<8x64xf32>
    %267 = arith.maximumf %265, %266 : vector<8x64xf32>
    %c0_90 = arith.constant 0 : index
    %c0_91 = arith.constant 0 : index
    %268 = vector.load %arg14[%c0_90, %c0_91] : memref<32x64xf32, #tpu.memory_space<vmem>>, vector<32x64xf32>
    %cst_92 = arith.constant dense<0.000000e+00> : vector<8x32xf32>
    %269 = tpu.matmul %267, %268, %cst_92 {dimension_numbers = #tpu.dot_dimension_numbers<[1], [1], [0], [0], [0, 0, 1, 0], [], []>} : vector<8x64xf32>, vector<32x64xf32>, vector<8x32xf32> -> vector<8x32xf32>
    %c0_93 = arith.constant 0 : index
    %c0_94 = arith.constant 0 : index
    %270 = vector.load %arg15[%c0_93, %c0_94] : memref<1x32xf32, #tpu.memory_space<vmem>>, vector<1x32xf32>
    %271 = vector.broadcast %270 : vector<1x32xf32> to vector<8x32xf32>
    %272 = arith.addf %269, %271 : vector<8x32xf32>
    %273 = arith.addf %260, %272 : vector<8x32xf32>
    %c0_95 = arith.constant 0 : index
    %c0_96 = arith.constant 0 : index
    %274 = vector.load %arg16[%c0_95, %c0_96] : memref<1x32xf32, #tpu.memory_space<vmem>>, vector<1x32xf32>
    %c0_97 = arith.constant 0 : index
    %c0_98 = arith.constant 0 : index
    %275 = vector.load %arg17[%c0_97, %c0_98] : memref<1x32xf32, #tpu.memory_space<vmem>>, vector<1x32xf32>
    %cst_99 = arith.constant dense<0.000000e+00> : vector<8xf32>
    %276 = vector.multi_reduction <add>, %273, %cst_99 [1] : vector<8x32xf32> to vector<8xf32>
    %277 = vector.shape_cast %276 : vector<8xf32> to vector<8x1xf32>
    %cst_100 = arith.constant 3.200000e+01 : f32
    %278 = vector.broadcast %cst_100 : f32 to vector<8x1xf32>
    %279 = arith.divf %277, %278 : vector<8x1xf32>
    %280 = vector.broadcast %279 : vector<8x1xf32> to vector<8x32xf32>
    %281 = arith.subf %273, %280 : vector<8x32xf32>
    %282 = arith.mulf %281, %281 : vector<8x32xf32>
    %cst_101 = arith.constant dense<0.000000e+00> : vector<8xf32>
    %283 = vector.multi_reduction <add>, %282, %cst_101 [1] : vector<8x32xf32> to vector<8xf32>
    %284 = vector.shape_cast %283 : vector<8xf32> to vector<8x1xf32>
    %cst_102 = arith.constant 3.200000e+01 : f32
    %285 = vector.broadcast %cst_102 : f32 to vector<8x1xf32>
    %286 = arith.divf %284, %285 : vector<8x1xf32>
    %287 = vector.broadcast %279 : vector<8x1xf32> to vector<8x32xf32>
    %288 = arith.subf %273, %287 : vector<8x32xf32>
    %cst_103 = arith.constant 9.99999974E-6 : f32
    %289 = vector.broadcast %cst_103 : f32 to vector<8x1xf32>
    %290 = arith.addf %286, %289 : vector<8x1xf32>
    %291 = math.rsqrt %290 : vector<8x1xf32>
    %292 = vector.broadcast %291 : vector<8x1xf32> to vector<8x32xf32>
    %293 = arith.mulf %288, %292 : vector<8x32xf32>
    %294 = vector.broadcast %274 : vector<1x32xf32> to vector<8x32xf32>
    %295 = arith.mulf %293, %294 : vector<8x32xf32>
    %296 = vector.broadcast %275 : vector<1x32xf32> to vector<8x32xf32>
    %297 = arith.addf %295, %296 : vector<8x32xf32>
    %c0_104 = arith.constant 0 : index
    %c0_105 = arith.constant 0 : index
    %c0_106 = arith.constant 0 : index
    %298 = vector.load %arg18[%c0_104, %c0_105, %c0_106] : memref<1x8x32xf32, #tpu.memory_space<vmem>>, vector<1x8x32xf32>
    %299 = vector.shape_cast %298 : vector<1x8x32xf32> to vector<8x32xf32>
    %300 = vector.shape_cast %297 : vector<8x32xf32> to vector<1x8x32xf32>
    tpu.vector_store %arg18[%c0_104, %c0_105, %c0_106], %300 {strides = array<i32>} : memref<1x8x32xf32, #tpu.memory_space<vmem>>, vector<1x8x32xf32>,
    return
  }
  func.func @transform_0(%arg0: i32) -> (i32, i32, i32) {
    %c0_i32 = arith.constant 0 : i32
    %c0_i32_0 = arith.constant 0 : i32
    %c0_i32_1 = arith.constant 0 : i32
    return %arg0, %c0_i32, %c0_i32_0 : i32, i32, i32
  }
  func.func @transform_1(%arg0: i32) -> (i32, i32, i32) {
    %c0_i32 = arith.constant 0 : i32
    %c0_i32_0 = arith.constant 0 : i32
    %c0_i32_1 = arith.constant 0 : i32
    return %arg0, %c0_i32, %c0_i32_0 : i32, i32, i32
  }
  func.func @transform_2(%arg0: i32) -> (i32, i32) {
    %c0_i32 = arith.constant 0 : i32
    %c0_i32_0 = arith.constant 0 : i32
    %c0_i32_1 = arith.constant 0 : i32
    return %c0_i32, %c0_i32_0 : i32, i32
  }
  func.func @transform_3(%arg0: i32) -> (i32, i32) {
    %c0_i32 = arith.constant 0 : i32
    %c0_i32_0 = arith.constant 0 : i32
    %c0_i32_1 = arith.constant 0 : i32
    return %c0_i32, %c0_i32_0 : i32, i32
  }
  func.func @transform_4(%arg0: i32) -> (i32, i32, i32) {
    %c0_i32 = arith.constant 0 : i32
    %c0_i32_0 = arith.constant 0 : i32
    %c0_i32_1 = arith.constant 0 : i32
    %c0_i32_2 = arith.constant 0 : i32
    return %c0_i32, %c0_i32_0, %c0_i32_1 : i32, i32, i32
  }
  func.func @transform_5(%arg0: i32) -> (i32, i32, i32) {
    %c0_i32 = arith.constant 0 : i32
    %c0_i32_0 = arith.constant 0 : i32
    %c0_i32_1 = arith.constant 0 : i32
    %c0_i32_2 = arith.constant 0 : i32
    return %c0_i32, %c0_i32_0, %c0_i32_1 : i32, i32, i32
  }
  func.func @transform_6(%arg0: i32) -> (i32, i32, i32) {
    %c0_i32 = arith.constant 0 : i32
    %c0_i32_0 = arith.constant 0 : i32
    %c0_i32_1 = arith.constant 0 : i32
    return %arg0, %c0_i32, %c0_i32_0 : i32, i32, i32
  }
  func.func @transform_7(%arg0: i32) -> (i32, i32, i32) {
    %c0_i32 = arith.constant 0 : i32
    %c0_i32_0 = arith.constant 0 : i32
    %c0_i32_1 = arith.constant 0 : i32
    %c0_i32_2 = arith.constant 0 : i32
    return %c0_i32, %c0_i32_0, %c0_i32_1 : i32, i32, i32
  }
  func.func @transform_8(%arg0: i32) -> (i32, i32) {
    %c0_i32 = arith.constant 0 : i32
    %c0_i32_0 = arith.constant 0 : i32
    %c0_i32_1 = arith.constant 0 : i32
    return %c0_i32, %c0_i32_0 : i32, i32
  }
  func.func @transform_9(%arg0: i32) -> (i32, i32) {
    %c0_i32 = arith.constant 0 : i32
    %c0_i32_0 = arith.constant 0 : i32
    %c0_i32_1 = arith.constant 0 : i32
    return %c0_i32, %c0_i32_0 : i32, i32
  }
  func.func @transform_10(%arg0: i32) -> (i32, i32) {
    %c0_i32 = arith.constant 0 : i32
    %c0_i32_0 = arith.constant 0 : i32
    %c0_i32_1 = arith.constant 0 : i32
    return %c0_i32, %c0_i32_0 : i32, i32
  }
  func.func @transform_11(%arg0: i32) -> (i32, i32) {
    %c0_i32 = arith.constant 0 : i32
    %c0_i32_0 = arith.constant 0 : i32
    %c0_i32_1 = arith.constant 0 : i32
    return %c0_i32, %c0_i32_0 : i32, i32
  }
  func.func @transform_12(%arg0: i32) -> (i32, i32) {
    %c0_i32 = arith.constant 0 : i32
    %c0_i32_0 = arith.constant 0 : i32
    %c0_i32_1 = arith.constant 0 : i32
    return %c0_i32, %c0_i32_0 : i32, i32
  }
  func.func @transform_13(%arg0: i32) -> (i32, i32) {
    %c0_i32 = arith.constant 0 : i32
    %c0_i32_0 = arith.constant 0 : i32
    %c0_i32_1 = arith.constant 0 : i32
    return %c0_i32, %c0_i32_0 : i32, i32
  }
  func.func @transform_14(%arg0: i32) -> (i32, i32) {
    %c0_i32 = arith.constant 0 : i32
    %c0_i32_0 = arith.constant 0 : i32
    %c0_i32_1 = arith.constant 0 : i32
    return %c0_i32, %c0_i32_0 : i32, i32
  }
  func.func @transform_15(%arg0: i32) -> (i32, i32) {
    %c0_i32 = arith.constant 0 : i32
    %c0_i32_0 = arith.constant 0 : i32
    %c0_i32_1 = arith.constant 0 : i32
    return %c0_i32, %c0_i32_0 : i32, i32
  }
  func.func @transform_16(%arg0: i32) -> (i32, i32) {
    %c0_i32 = arith.constant 0 : i32
    %c0_i32_0 = arith.constant 0 : i32
    %c0_i32_1 = arith.constant 0 : i32
    return %c0_i32, %c0_i32_0 : i32, i32
  }
  func.func @transform_17(%arg0: i32) -> (i32, i32, i32) {
    %c0_i32 = arith.constant 0 : i32
    %c0_i32_0 = arith.constant 0 : i32
    %c0_i32_1 = arith.constant 0 : i32
    return %arg0, %c0_i32, %c0_i32_0 : i32, i32, i32
  }
}

</mosaic_0001>

<bundles_post_ra>
// kernel: tpu_custom_call.1
= control target key start
LH: loop header
LB: loop body
LE: loop exit
PB: predicated region body
PF: predicated region fallthrough
CT: control target
= control target key end

     0   :  { %s1967_s0 = inlined_call_operand.vmem [shape: f32[2,8,32], index: 0, kind: input, shape index: {}]   ;;  %s1968_s1 = inlined_call_operand.vmem [shape: f32[2,8,32], index: 1, kind: input, shape index: {}]   ;;  %s1969_s2 = inlined_call_operand.vmem [shape: f32[48,32], index: 2, kind: input, shape index: {}]   ;;  %s1970_s3 = inlined_call_operand.vmem [shape: f32[16,32], index: 3, kind: input, shape index: {}]   ;;  %s1971_s4 = inlined_call_operand.vmem [shape: f32[2,1,8], index: 4, kind: input, shape index: {}]   ;;  %s1972_s5 = inlined_call_operand.vmem [shape: f32[2,1,8], index: 5, kind: input, shape index: {}]   ;;  %s1973_s6 = inlined_call_operand.vmem [shape: f32[2,8,8], index: 6, kind: input, shape index: {}]   ;;  %s1974_s7 = inlined_call_operand.vmem [shape: f32[2,8,8], index: 7, kind: input, shape index: {}]   ;;  %s1975_s8 = inlined_call_operand.vmem [shape: f32[32,16], index: 8, kind: input, shape index: {}]   ;;  %s1976_s9 = inlined_call_operand.vmem [shape: f32[1,32], index: 9, kind: input, shape index: {}]   ;;  %s1977_s10 = inlined_call_operand.vmem [shape: f32[1,32], index: 10, kind: input, shape index: {}]   ;;  %s1978_s11 = inlined_call_operand.vmem [shape: f32[64,32], index: 11, kind: input, shape index: {}]   ;;  %s1979_s12 = inlined_call_operand.vmem [shape: f32[1,64], index: 12, kind: input, shape index: {}]   ;;  %s1980_s13 = inlined_call_operand.vmem [shape: f32[32,64], index: 13, kind: input, shape index: {}]   ;;  %s1981_s14 = inlined_call_operand.vmem [shape: f32[1,32], index: 14, kind: input, shape index: {}]   ;;  %s1982_s15 = inlined_call_operand.vmem [shape: f32[1,32], index: 15, kind: input, shape index: {}]   ;;  %s1983_s16 = inlined_call_operand.vmem [shape: f32[1,32], index: 16, kind: input, shape index: {}]   ;;  %s1984_s17 = inlined_call_operand.hbm [shape: f32[2,8,32], index: 17, kind: output, shape index: {}]  }
   0x1   :  { %1992 = sst [smem:[#allocation11_spill]] %s1967_s0 }
   0x2   :  { %1993 = sst [smem:[#allocation12_spill]] %s1968_s1 }
   0x3   :  { %1994 = sst [smem:[#allocation13_spill]] %s1969_s2 }
   0x4   :  { %22 = vsyncpa [#allocation3], 0 }
   0x5   :  { %24 = vsyncpa [#allocation3 + $0x1], 0  ;;  %s1640_s24 = smov 0   ;;  %s1642_s25 = smov 0  }
   0x6   :  { %s1644_s26 = smov 0   ;;  %s1646_s27 = smov 0  }
   0x7 LB: > { %1995 = sst [smem:[#allocation5_spill]] %s1521_s24  ;;  %s1661_s28 = sadd.s32 4294967295, %s1533_s27   ;;  %s1533_s27 = sphi %s1646_s27, %s2010_s27   ;;  %s1529_s26 = sphi %s1644_s26, %s2012_s26   ;;  %s1525_s25 = sphi %s1642_s25, %s2014_s25   ;;  %s1521_s24 = sphi %s1640_s24, %s2013_s24  }
   0x8   : > { %1996 = sst [smem:[#allocation6_spill]] %s1529_s26  ;;  %s1322_s29 = sadd.s32 4294967294, %s1533_s27  }
   0x9   : > { %1997 = sst [smem:[#allocation7_spill]] %s1533_s27  ;;  %s1665_s0 = sadd.s32 1, %s1533_s27  }
   0xa   : > { %1998 = sst [smem:[#allocation8_spill]] %s1665_s0  ;;  %s409_s30 = sadd.s32 1, %s1529_s26 }
   0xb   : > { %s406_s18 = ssub.s32 %s1533_s27, %s1665_s0  ;;  %p419_p0 = scmp.ne.s32.totalorder %s1529_s26, %s1525_s25 }
   0xc   : > { %p407_p1 = scmp.eq.s32.totalorder %s406_s18, 0  ;;  %p420_p2 = scmp.eq.s32.totalorder %s1661_s28, 1 }
   0xd   : > { %p425_p3 = scmp.ne.s32.totalorder %s1525_s25, %s1521_s24  ;;  %p426_p4 = scmp.eq.s32.totalorder %s1322_s29, 1 }
   0xe   : > { %s1676_s19 = scalar_select %p407_p1, %s1529_s26, %s409_s30  }
   0xf   : > { %p1678_p5 = por %p420_p2, %p419_p0  ;;  %p1682_p6 = por %p426_p4, %p425_p3 }
  0x10   : > { %1999 = sst [smem:[#allocation9_spill]] %s1676_s19  ;;  %p1325_p7 = scmp.ge.s32.totalorder %s1533_s27, 1 }
  0x11   : > { %s2001_s20 = scalar_select %p1682_p6, 1, 0 }
  0x12   : > { %p507_p8 = scmp.lt.s32.totalorder %s1533_s27, 3 }
  0x13   : > { %2002 = sst [smem:[#allocation10_spill]] %s2001_s20 }
  0x14   : > { %p508_p9 = pnand %p1325_p7, %p507_p8 }
  0x15   : > { %s2003_s2 = sld [smem:[#allocation13_spill]] (!%p508_p9)  ;;  %s1988_s21 = smov (!%p508_p9), 8  }
  0x16   : > { %511 = sbr.rel (%p508_p9) target bundleno = 2033 (0x7f1), region = 88  ;;  %p566_p10 = scmp.lt.s32.totalorder (!%p508_p9), %s1661_s28, 1 }
  0x17   : > { %s2004_s29 = sld [smem:[#allocation11_spill]] (!%p508_p9)  ;;  %s1536_s27 = smov (!%p508_p9), 104  }
  0x18   : > { %s2005_s0 = sld [smem:[#allocation12_spill]] (!%p508_p9)  ;;  %s1547_s22 = smov (!%p508_p9), 88  }
  0x19   : > { %s1548_s23 = smov (!%p508_p9), 96  }
  0x1b   : > { %v585_v0 = vld [vmem:[%s2003_s2 + $0x28] sm:$0xff]  ;;  %vm586_vm0 = vcmask 261120   ;;  %v584_v1 = vld [vmem:[%s2003_s2 + $0x20] sm:$0xff]  ;;  %v583_v4 = vld [vmem:[%s2003_s2 + $0x18] sm:$0xff]  ;;  %s567_s26 = scalar_select %p566_p10, %s1661_s28, 1  ;;  %vm677_vm1 = vcmask 64512   ;;  %v659_v39 = vlaneseq }
  0x1c   : > { %1330 = vmatpush.xpose.msk.msra.mxu0 %vm586_vm0, %v585_v0  ;;  %v1447_v2 = vld [vmem:[%s1972_s5 + $0x1] ss:$0 sm:$0xff]  ;;  %v582_v5 = vld [vmem:[%s2003_s2 + $0x10] sm:$0xff]  ;;  %v581_v6 = vld [vmem:[%s2003_s2 + $0x8] sm:$0xff]  ;;  %v1539_v21 = vmov 5   ;;  %v1540_v22 = vmov 6  }
  0x1d   : > { %v1448_v3 = vld [vmem:[%s1971_s4 + $0x1] ss:$0 sm:$0xff]  ;;  %847 = vrot.lane.b32.xlu0 %v1447_v2, %s1988_s21  ;;  %s1717_s18 = sshll.u32 %s567_s26, 3  ;;  %v629_v8 = vld [vmem:[%s1970_s3 + $0x8] sm:$0xff]  ;;  %v1449_v15 = vld [vmem:[%s1972_s5] ss:$0 sm:$0xff]  ;;  %1431 = vset.pattern.permute.xlu2 %v1540_v22 }
  0x1e   : > { %841 = vrot.lane.b32.xlu2 %v1448_v3, %s1988_s21  ;;  %v580_v7 = vld [vmem:[%s2003_s2] sm:$0xff]  ;;  %s569_s20 = scalar_lea.vmem %s2004_s29, %s1717_s18  ;;  %s573_s24 = scalar_lea.vmem %s2005_s0, %s1717_s18  ;;  %1432 = vset.pattern.permute.xlu0 %v1539_v21  ;;  %v1541_v23 = vmov 7   ;;  %v1542_v31 = vmov 3   ;;  %v1543_v32 = vmov 4   ;;  %v1544_v33 = vmov 2  }
  0x1f   : > { %v1731_v9 = vld [vmem:[%s569_s20] sm:$0xff]  ;;  %s1537_s20 = smov 112   ;;  %s1538_s29 = smov 120   ;;  %1430 = vset.pattern.permute.xlu1 %v1541_v23  ;;  %v1545_v34 = vmov 1   ;;  %v1546_v35 = vmov 0   ;;  %v1767_v41 = vshrl.u32 %v659_v39, 7 }
  0x20   : > { %1331 = vmatpush.xpose.msk.msra.mxu0 %vm586_vm0, %v584_v1  ;;  %v628_v10 = vld [vmem:[%s1970_s3] sm:$0xff]  ;;  %v1769_v42 = vand.u32 127, %v659_v39  ;;  %s577_s0 = scalar_lea.vmem %s1973_s6, %s1717_s18  ;;  %vm1009_vm11 = vcmask 130048   ;;  %s2006_s18 = smov 8   ;;  %vm1153_vm13 = vcmask 523264  }
  0x21   : > { %v579_v11 = vld [vmem:[%s573_s24] sm:$0xff] }
  0x22   : > { %v1450_v24 = vld [vmem:[%s1971_s4] ss:$0 sm:$0xff]  ;;  %v1773_v43 = vsub.s32 %v1767_v41, %v1769_v42  ;;  %vm663_vm10 = vcmp.gt.s32.totalorder %v1769_v42, %v1767_v41 }
  0x23   : > { %v664_v63 = vld [vmem:[%s577_s0] sm:$0xff]  ;;  %s563_s0 = sand.u32 1, %s1525_s25  }
  0x24   : > { %1332 = vmatpush.xpose.msk.msra.mxu0 %vm586_vm0, %v583_v4  ;;  %vm705_vm2 = vcmp.eq.s32.totalorder %v1773_v43, 0  ;;  %vm713_vm3 = vcmp.eq.s32.totalorder %v1773_v43, 1  ;;  %vm720_vm4 = vcmp.eq.s32.totalorder %v1773_v43, 2  ;;  %vm727_vm5 = vcmp.eq.s32.totalorder %v1773_v43, 3  ;;  %v667_v0 = vld [vmem:[%s1974_s7] sm:$0xff]  ;;  %s1326_s24 = sshll.u32 %s563_s0, 3 }
  0x25   : > { %vm734_vm6 = vcmp.eq.s32.totalorder %v1773_v43, 4  ;;  %vm741_vm7 = vcmp.eq.s32.totalorder %v1773_v43, 5  ;;  %vm748_vm8 = vcmp.eq.s32.totalorder %v1773_v43, 6  ;;  %vm755_vm9 = vcmp.eq.s32.totalorder %v1773_v43, 7  ;;  %s565_s21 = scalar_lea.vmem [#allocation2], %s1326_s24  ;;  %s1491_s24 = scalar_lea.hbm %s1984_s17, 16 }
  0x26   : > { %v668_v3 = vmul.f32 %v667_v0, %v664_v63  ;;  %v1007_v0 = vld [vmem:[%s1975_s8 + $0x10] sm:$0xff] }
  0x28   : > { %1333 = vmatpush.xpose.msk.msra.mxu0 %vm586_vm0, %v582_v5 }
  0x2c   : > { %1334 = vmatpush.xpose.msk.msra.mxu0 %vm586_vm0, %v581_v6 }
  0x30   : > { %1335 = vmatpush.xpose.msk.msra.mxu0 %vm586_vm0, %v580_v7 }
  0x33   : > { %1336 = vmatmul.msk.f32.vlgmr.msra.gmra.mxu0 %vm586_vm0, %v1731_v9 }
  0x34   : > { %1337 = vmatpush.xpose.msk.msrb.mxu0 %vm586_vm0, %v629_v8 }
  0x38   : > { %1338 = vmatpush.xpose.msk.msrb.mxu0 %vm586_vm0, %v628_v10 }
  0x3b   : > { %1339 = vmatmul.msk.f32.vlgmr.msrb.gmra.mxu0 %vm586_vm0, %v579_v11 }
  0x78   : > { %v842_v13 = vpop.permute.xlu2 %841 }
  0x8f   : > { %v848_v18 = vpop.permute.xlu0 %847 }
  0xb0   : > { %v1745_v12 = vpop.f32.mrf.mxu0 }
  0xb1   : > { %932 = vrot.lane.b32.xlu2 %v1745_v12, %s1536_s27  ;;  %763 = vrot.lane.b32.xlu0 %v1745_v12, %s1537_s20  ;;  %v844_v14 = vadd.f32 %v842_v13, %v1745_v12  ;;  %v676_v17 = vadd.f32 %v1449_v15, %v1745_v12  ;;  %v850_v19 = vadd.f32 %v848_v18, %v1745_v12  ;;  %s1373_s27 = sshll.u32 %s1661_s28, 3  ;;  %s1236_s28 = sshll.u32 %s565_s21, 4  ;;  %s1237_s28 = int_to_ptr.vmem [resolvable:$true] %s1236_s28 }
  0xb2   : > { %v672_v26 = vadd.f32 %v1450_v24, %v1745_v12 }
  0xb8   : > { %v656_v16 = vpop.f32.mrf.mxu0 }
  0xb9   : > { %930 = vrot.lane.b32.xlu0 %v844_v14, %s1538_s29  ;;  %854 = vrot.lane.b32.xlu1 %v656_v16, %s1538_s29 }
  0xba   : > { %1340 = vmatpush.xpose.msk.msra.mxu2 %vm677_vm1, %v656_v16 }
  0xbd   : > { %1341 = vmatmul.msk.f32.vlgmr.msra.gmra.mxu2 %vm677_vm1, %v676_v17 }
  0xc1   : > { %852 = vrot.lane.b32.xlu1 %v850_v19, %s1538_s29  ;;  %s1234_s29 = scalar_lea.hbm %s1984_s17, %s1373_s27 }
  0xc2   : > { %s1238_s30 = sshll.u32 %s1234_s29, 4  ;;  %s1239_s30 = int_to_ptr.hbm [resolvable:$true] %s1238_s30 }
  0xc3   : > { %s1485_s20 = sshra.s32 %s1239_s30, 4  ;;  %s1486_s20 = int_to_ptr.hbm [resolvable:$true] %s1485_s20 }
  0xc4   : > { %s1487_s27 = scalar_lea.hbm %s1486_s20, 8  ;;  %p1492_p0 = scmp.lt.s32.totalorder %s1486_s20, %s1984_s17 }
  0xc5   : > { %p1488_p11 = scmp.ne.s32.totalorder %s1486_s20, %s1487_s27  ;;  %p1493_p1 = scmp.lt.s32.totalorder %s1491_s24, %s1487_s27 }
  0xc7   : > { %p1489_p12 = pnand %p1488_p11, %p1678_p5  ;;  %p1494_p2 = por %p1493_p1, %p1492_p0 }
  0xc9   : > { %p1490_p13 = pneg %p1489_p12 }
  0xcb   : > { %p1495_p3 = pnand %p1494_p2, %p1490_p13 }
 0x10b   : > { %v933_v20 = vpop.permute.xlu2 %932 }
 0x10c   : > { %1350 = vmatpush.xpose.msk.msra.mxu1 %vm677_vm1, %v933_v20 }
 0x123   : > { %v764_v25 = vpop.permute.xlu0 %763 }
 0x124   : > { %1342 = vmatpush.xpose.msk.msra.mxu3 %vm677_vm1, %v764_v25 }
 0x127   : > { %1343 = vmatmul.msk.f32.vlgmr.msra.gmra.mxu3 %vm677_vm1, %v672_v26 }
 0x12b   : > { %v931_v27 = vpop.permute.xlu0 %930  ;;  %v855_v28 = vpop.permute.xlu1 %854 }
 0x12c   : > { %1348 = vmatpush.xpose.msk.msrb.mxu3 %vm677_vm1, %v855_v28  ;;  %1351 = vmatmul.msk.f32.vlgmr.msra.gmra.mxu1 %vm677_vm1, %v931_v27 }
 0x133   : > { %v853_v29 = vpop.permute.xlu1 %852 }
 0x134   : > { %1349 = vmatmul.msk.f32.vlgmr.msrb.gmra.mxu3 %vm677_vm1, %v853_v29 }
 0x140   : > { %v701_v30 = vpop.f32.mrf.mxu2 }
 0x141   : > { %722 = vperm.xlu0 %1432, %v701_v30   ;;  %715 = vperm.xlu2 %1431, %v701_v30  }
 0x142   : > { %708 = vperm.xlu1 %1430, %v701_v30  }
 0x149   : > { %1434 = vset.pattern.permute.xlu2 %v1542_v31  ;;  %1439 = vset.pattern.permute.xlu0 %v1540_v22 }
 0x14a   : > { %1433 = vset.pattern.permute.xlu1 %v1543_v32  ;;  %736 = vperm.xlu2 %1434, %v701_v30  }
 0x14b   : > { %729 = vperm.xlu1 %1433, %v701_v30  }
 0x152   : > { %1438 = vset.pattern.permute.xlu2 %v1541_v23 }
 0x153   : > { %1435 = vset.pattern.permute.xlu1 %v1544_v33 }
 0x154   : > { %743 = vperm.xlu1 %1435, %v701_v30  }
 0x15c   : > { %1436 = vset.pattern.permute.xlu1 %v1545_v34 }
 0x15d   : > { %750 = vperm.xlu1 %1436, %v701_v30  }
 0x165   : > { %1437 = vset.pattern.permute.xlu1 %v1546_v35 }
 0x166   : > { %757 = vperm.xlu1 %1437, %v701_v30  }
 0x16e   : > { %1443 = vset.pattern.permute.xlu1 %v1544_v33 }
 0x19b   : > { %v716_v44 = vpop.permute.xlu2 %715 }
 0x19c   : > { %v718_v47 = vsel %vm713_vm3, %v716_v44, 0.0 }
 0x1a4   : > { %v737_v54 = vpop.permute.xlu2 %736 }
 0x1a5   : > { %v739_v56 = vsel %vm734_vm6, %v737_v54, 0.0 }
 0x1aa   : > { %v787_v36 = vpop.f32.mrf.mxu3 }
 0x1b3   : > { %v723_v48 = vpop.permute.xlu0 %722 }
 0x1b4   : > { %v709_v37 = vpop.permute.xlu1 %708  ;;  %v725_v50 = vsel %vm720_vm4, %v723_v48, 0.0 }
 0x1b5   : > { %v711_v46 = vsel %vm705_vm2, %v709_v37, 0.0  ;;  %v955_v37 = vpop.f32.mrf.mxu1 }
 0x1b6   : > { %v719_v49 = vadd.f32 %v718_v47, %v711_v46 }
 0x1b7   : > { %v877_v38 = vpop.f32.mrf.mxu3 }
 0x1b8   : > { %888 = vperm.xlu0 %1439, %v877_v38   ;;  %882 = vperm.xlu2 %1438, %v877_v38   ;;  %v726_v52 = vadd.f32 %v725_v50, %v719_v49 }
 0x1b9   : > { %912 = vperm.xlu1 %1443, %v877_v38  }
 0x1bd   : > { %v730_v40 = vpop.permute.xlu1 %729 }
 0x1be   : > { %v732_v51 = vsel %vm727_vm5, %v730_v40, 0.0 }
 0x1bf   : > { %v733_v55 = vadd.f32 %v732_v51, %v726_v52 }
 0x1c0   : > { %1442 = vset.pattern.permute.xlu0 %v1542_v31  ;;  %1440 = vset.pattern.permute.xlu2 %v1539_v21 }
 0x1c1   : > { %1445 = vset.pattern.permute.xlu1 %v1546_v35  ;;  %906 = vperm.xlu0 %1442, %v877_v38   ;;  %v740_v58 = vadd.f32 %v739_v56, %v733_v55 }
 0x1c2   : > { %894 = vperm.xlu2 %1440, %v877_v38   ;;  %924 = vperm.xlu1 %1445, %v877_v38  }
 0x1c6   : > { %v744_v45 = vpop.permute.xlu1 %743 }
 0x1c7   : > { %v746_v57 = vsel %vm741_vm7, %v744_v45, 0.0 }
 0x1c8   : > { %v747_v60 = vadd.f32 %v746_v57, %v740_v58 }
 0x1c9   : > { %1446 = vset.pattern.permute.xlu0 %v1546_v35 }
 0x1ca   : > { %1441 = vset.pattern.permute.xlu2 %v1543_v32 }
 0x1cb   : > { %900 = vperm.xlu2 %1441, %v877_v38  }
 0x1cf   : > { %v751_v53 = vpop.permute.xlu1 %750 }
 0x1d0   : > { %v753_v59 = vsel %vm748_vm8, %v751_v53, 0.0 }
 0x1d1   : > { %v754_v61 = vadd.f32 %v753_v59, %v747_v60 }
 0x1d3   : > { %1444 = vset.pattern.permute.xlu2 %v1545_v34  ;;  %v1347_v34 = vld [vmem:[%s1974_s7 + $0x8] sm:$0xff] }
 0x1d4   : > { %918 = vperm.xlu2 %1444, %v877_v38   ;;  %v838_v38 = vmul.f32 %v1347_v34, %v664_v63 }
 0x1d8   : > { %v758_v62 = vpop.permute.xlu1 %757 }
 0x1d9   : > { %v760_v1 = vsel %vm755_vm9, %v758_v62, 0.0 }
 0x1da   : > { %v761_v2 = vadd.f32 %v760_v1, %v754_v61  ;;  %v1006_v1 = vld [vmem:[%s1975_s8 + $0x8] sm:$0xff] }
 0x1dc   : > { %v788_v4 = vadd.f32 %v787_v36, %v761_v2  ;;  %v1005_v2 = vld [vmem:[%s1975_s8] sm:$0xff] }
 0x1de   : > { %v790_v5 = vmul.f32 0.35355338, %v788_v4 }
 0x1e0   : > { %v791_v6 = vmul.f32 %v790_v5, %v668_v3 }
 0x1e2   : > { %v792_v7 = vmul.f32 0.35355338, %v791_v6 }
 0x1e4   : > { %v793_v8 = vadd.f32 %v792_v7, %v790_v5 }
 0x1e6   : > { %v794_v10 = vsel %vm663_vm10, -1e+09, %v793_v8 }
 0x1e7   : > { %v795_v11 = vsel %vm677_vm1, %v794_v10, -inf }
 0x1fd   : > { %796 = vmax.xlane.f32.xlu2 %v795_v11  ;;  %v1549_v11 = vmov 32.0  }
 0x212   : > { %v883_v13 = vpop.permute.xlu2 %882 }
 0x213   : > { %v885_v16 = vsel %vm705_vm2, %v883_v13, 0.0  ;;  %v1092_v13 = vld [vmem:[%s1978_s11 + $0x38] sm:$0xff] }
 0x214   : > { %1358 = vmatpush.xpose.msk.msrb.mxu1 %vm586_vm0, %v1092_v13  ;;  %v1456_v13 = vld [vmem:[%s1983_s16] ss:$0 sm:$0xff] }
 0x21c   : > { %v895_v14 = vpop.permute.xlu2 %894 }
 0x21d   : > { %v897_v21 = vsel %vm720_vm4, %v895_v14, 0.0 }
 0x225   : > { %v901_v17 = vpop.permute.xlu2 %900 }
 0x226   : > { %v903_v23 = vsel %vm727_vm5, %v901_v17, 0.0 }
 0x22a   : > { %v889_v15 = vpop.permute.xlu0 %888 }
 0x22b   : > { %v891_v18 = vsel %vm713_vm3, %v889_v15, 0.0  ;;  %v913_v20 = vpop.permute.xlu1 %912 }
 0x22c   : > { %v892_v19 = vadd.f32 %v891_v18, %v885_v16  ;;  %v915_v29 = vsel %vm741_vm7, %v913_v20, 0.0 }
 0x22e   : > { %v898_v22 = vadd.f32 %v897_v21, %v892_v19  ;;  %v919_v27 = vpop.permute.xlu2 %918 }
 0x22f   : > { %v921_v32 = vsel %vm748_vm8, %v919_v27, 0.0  ;;  %v1088_v27 = vld [vmem:[%s1978_s11 + $0x18] sm:$0xff] }
 0x230   : > { %v904_v25 = vadd.f32 %v903_v23, %v898_v22 }
 0x233   : > { %v907_v24 = vpop.permute.xlu0 %906 }
 0x234   : > { %v909_v26 = vsel %vm734_vm6, %v907_v24, 0.0  ;;  %v925_v31 = vpop.permute.xlu1 %924  ;;  %v1091_v24 = vld [vmem:[%s1978_s11 + $0x30] sm:$0xff] }
 0x235   : > { %v910_v28 = vadd.f32 %v909_v26, %v904_v25  ;;  %v927_v35 = vsel %vm755_vm9, %v925_v31, 0.0  ;;  %1359 = vmatpush.xpose.msk.msrb.mxu1 %vm586_vm0, %v1091_v24  ;;  %v1090_v25 = vld [vmem:[%s1978_s11 + $0x28] sm:$0xff]  ;;  %v1089_v26 = vld [vmem:[%s1978_s11 + $0x20] sm:$0xff]  ;;  %v1148_v31 = vld [vmem:[%s1980_s13 + $0x18] sm:$0xff] }
 0x237   : > { %v916_v30 = vadd.f32 %v915_v29, %v910_v28  ;;  %v1087_v28 = vld [vmem:[%s1978_s11 + $0x10] sm:$0xff]  ;;  %v1086_v29 = vld [vmem:[%s1978_s11 + $0x8] sm:$0xff] }
 0x239   : > { %v922_v33 = vadd.f32 %v921_v32, %v916_v30  ;;  %1360 = vmatpush.xpose.msk.msrb.mxu1 %vm586_vm0, %v1090_v25  ;;  %v1085_v30 = vld [vmem:[%s1978_s11] sm:$0xff]  ;;  %v1147_v32 = vld [vmem:[%s1980_s13 + $0x10] sm:$0xff] }
 0x23b   : > { %v928_v36 = vadd.f32 %v927_v35, %v922_v33 }
 0x23d   : > { %v956_v39 = vadd.f32 %v955_v37, %v928_v36  ;;  %1361 = vmatpush.xpose.msk.msrb.mxu1 %vm586_vm0, %v1089_v26  ;;  %v1146_v36 = vld [vmem:[%s1980_s13 + $0x8] sm:$0xff] }
 0x23f   : > { %v958_v40 = vmul.f32 0.35355338, %v956_v39 }
 0x241   : > { %v959_v44 = vmul.f32 %v958_v40, %v838_v38  ;;  %1362 = vmatpush.xpose.msk.msrb.mxu1 %vm586_vm0, %v1088_v27 }
 0x243   : > { %v960_v45 = vmul.f32 0.35355338, %v959_v44 }
 0x245   : > { %v961_v46 = vadd.f32 %v960_v45, %v958_v40  ;;  %1363 = vmatpush.xpose.msk.msrb.mxu1 %vm586_vm0, %v1087_v28 }
 0x247   : > { %v962_v47 = vsel %vm663_vm10, -1e+09, %v961_v46  ;;  %v1451_v46 = vld [vmem:[%s1976_s9] ss:$0 sm:$0xff] }
 0x248   : > { %v963_v48 = vsel %vm677_vm1, %v962_v47, -inf }
 0x249   : > { %964 = vmax.xlane.f32.xlu0 %v963_v48  ;;  %1364 = vmatpush.xpose.msk.msrb.mxu1 %vm586_vm0, %v1086_v29 }
 0x24d   : > { %1365 = vmatpush.xpose.msk.msrb.mxu1 %vm586_vm0, %v1085_v30 }
 0x25d   : > { %974 = vrot.lane.b32.xlu0 %v1745_v12, %s1547_s22 }
 0x270   : > { %v797_v43 = vpop.xlane.xlu2 %796 }
 0x271   : > { %v798_v49 = vsub.f32 %v794_v10, %v797_v43  ;;  %v1452_v43 = vld [vmem:[%s1977_s10] ss:$0 sm:$0xff] }
 0x273   : > { %v799_v50 = vmul.f32 1.442695, %v798_v49 }
 0x275   : > { %1457 = vpow2.f32 %v799_v50 }
 0x27b   : > { %v1458_v51 = vpop.eup %1457 }
 0x27c   : > { %v801_v52 = vsel %vm677_vm1, %v1458_v51, 0.0 }
 0x27d   : > { %802 = vadd.xlane.f32.xlu1 %v801_v52  ;;  %v1453_v52 = vld [vmem:[%s1979_s12] ss:$0 sm:$0xff] }
 0x2bc   : > { %v965_v53 = vpop.xlane.xlu0 %964 }
 0x2bd   : > { %v966_v54 = vsub.f32 %v962_v47, %v965_v53 }
 0x2bf   : > { %v967_v55 = vmul.f32 1.442695, %v966_v54 }
 0x2c1   : > { %1459 = vpow2.f32 %v967_v55 }
 0x2c7   : > { %v1460_v41 = vpop.eup %1459 }
 0x2c8   : > { %v969_v42 = vsel %vm677_vm1, %v1460_v41, 0.0 }
 0x2c9   : > { %970 = vadd.xlane.f32.xlu2 %v969_v42 }
 0x2cf   : > { %v975_v61 = vpop.permute.xlu0 %974 }
 0x2e1   : > { %806 = vrot.lane.b32.xlu2 %v1745_v12, %s1548_s23  ;;  %v1008_v12 = vld [vmem:[%s1975_s8 + $0x18] sm:$0xff] }
 0x2e2   : > { %1353 = vmatpush.xpose.msk.msra.mxu3 %vm1009_vm11, %v1008_v12 }
 0x2e6   : > { %1354 = vmatpush.xpose.msk.msra.mxu3 %vm1009_vm11, %v1007_v0 }
 0x2ea   : > { %1355 = vmatpush.xpose.msk.msra.mxu3 %vm1009_vm11, %v1006_v1 }
 0x2ee   : > { %1356 = vmatpush.xpose.msk.msra.mxu3 %vm1009_vm11, %v1005_v2 }
 0x2f0   : > { %v803_v56 = vpop.xlane.xlu1 %802 }
 0x2f1   : > { %1461 = vrcp.f32 %v803_v56 }
 0x2f7   : > { %v1462_v58 = vpop.eup %1461 }
 0x2f8   : > { %v805_v60 = vmul.f32 %v1462_v58, %v1458_v51  ;;  %v1145_v51 = vld [vmem:[%s1980_s13] sm:$0xff] }
 0x33c   : > { %v971_v57 = vpop.xlane.xlu2 %970 }
 0x33d   : > { %1463 = vrcp.f32 %v971_v57 }
 0x33e   : > { %1465 = vrcp.f32 %v1549_v11 }
 0x343   : > { %v1464_v62 = vpop.eup %1463 }
 0x344   : > { %v807_v59 = vpop.permute.xlu2 %806  ;;  %v973_v63 = vmul.f32 %v1464_v62, %v1460_v41  ;;  %v1466_v14 = vpop.eup %1465  ;;  %v1454_v41 = vld [vmem:[%s1981_s14] ss:$0 sm:$0xff] }
 0x345   : > { %827 = vmatpush.msrb.mxu2 %v807_v59  ;;  %v1052_v15 = vmul.f32 32.0, %v1466_v14  ;;  %vm1056_vm12 = vweird.f32 %v1466_v14 }
 0x346   : > { %1344 = vmatmul.msk.f32.vlgmr.msrb.gmra.mxu2 %vm677_vm1, %v805_v60 }
 0x347   : > { %995 = vmatpush.msra.mxu2 %v975_v61  ;;  %v1053_v16 = vsub.f32 1.0, %v1052_v15 }
 0x349   : > { %v1054_v17 = vmul.f32 %v1466_v14, %v1053_v16  ;;  %1367 = vmatpush.xpose.msk.msrb.mxu2 %vm1153_vm13, %v1148_v31 }
 0x34b   : > { %v1055_v18 = vadd.f32 %v1466_v14, %v1054_v17 }
 0x34d   : > { %v1861_v19 = vsel %vm1056_vm12, %v1466_v14, %v1055_v18  ;;  %1368 = vmatpush.xpose.msk.msrb.mxu2 %vm1153_vm13, %v1147_v32 }
 0x34e   : > { %1352 = vmatmul.msk.f32.vlgmr.msra.gmra.mxu2 %vm677_vm1, %v973_v63 }
 0x351   : > { %1369 = vmatpush.xpose.msk.msrb.mxu2 %vm1153_vm13, %v1146_v36 }
 0x355   : > { %1370 = vmatpush.xpose.msk.msrb.mxu2 %vm1153_vm13, %v1145_v51 }
 0x3c9   : > { %v829_v3 = vpop.f32.mrf.mxu2 }
 0x3d1   : > { %v997_v4 = vpop.f32.mrf.mxu2 }
 0x3d2   : > { %1001 = vrot.lane.b32.xlu1 %v997_v4, %s2006_s18  ;;  %s1224_s18 = scalar_lea.sflag [#allocation3], %s563_s0 }
 0x444   : > { %v1002_v5 = vpop.permute.xlu1 %1001 }
 0x445   : > { %v1004_v6 = vsel %vm677_vm1, %v829_v3, %v1002_v5 }
 0x446   : > { %1357 = vmatmul.msk.f32.vlgmr.msra.gmra.mxu3 %vm1009_vm11, %v1004_v6 }
 0x4c9   : > { %v1042_v7 = vpop.f32.mrf.mxu3 }
 0x4ca   : > { %v1045_v8 = vadd.f32 %v1042_v7, %v1731_v9 }
 0x4cc   : > { %v1048_v10 = vsel %vm586_vm0, %v1045_v8, 0.0 }
 0x4cd   : > { %1049 = vadd.xlane.f32.xlu0 %v1048_v10 }
 0x540   : > { %v1050_v9 = vpop.xlane.xlu0 %1049 }
 0x541   : > { %v1058_v20 = vmul.f32 %v1861_v19, %v1050_v9 }
 0x543   : > { %v1059_v21 = vsub.f32 %v1045_v8, %v1058_v20  ;;  %v1455_v8 = vld [vmem:[%s1982_s15] ss:$0 sm:$0xff] }
 0x545   : > { %v1060_v22 = vmul.f32 %v1059_v21, %v1059_v21 }
 0x547   : > { %v1061_v23 = vsel %vm586_vm0, %v1060_v22, 0.0 }
 0x548   : > { %1062 = vadd.xlane.f32.xlu2 %v1061_v23 }
 0x5bb   : > { %v1063_v33 = vpop.xlane.xlu2 %1062 }
 0x5bc   : > { %v1064_v34 = vmul.f32 %v1063_v33, %v1861_v19 }
 0x5be   : > { %v1065_v35 = vadd.f32 1e-05, %v1064_v34 }
 0x5c0   : > { %1467 = vrsqrt.f32 %v1065_v35  ;;  %vm1072_vm15 = vweird.f32 %v1065_v35 }
 0x5c6   : > { %v1468_v37 = vpop.eup %1467 }
 0x5c7   : > { %v1067_v38 = vmul.f32 %v1468_v37, %v1065_v35  ;;  %vm1073_vm14 = vweird.f32 %v1468_v37 }
 0x5c8   : > { %vm1074_vm1 = vmor %vm1072_vm15, %vm1073_vm14 }
 0x5c9   : > { %v1068_v39 = vmul.f32 %v1468_v37, %v1067_v38 }
 0x5cb   : > { %v1069_v40 = vmul.f32 0.5, %v1068_v39 }
 0x5cd   : > { %v1070_v44 = vsub.f32 1.5, %v1069_v40 }
 0x5cf   : > { %v1071_v45 = vmul.f32 %v1468_v37, %v1070_v44 }
 0x5d1   : > { %v1075_v47 = vsel %vm1074_vm1, %v1468_v37, %v1071_v45 }
 0x5d2   : > { %v1076_v48 = vmul.f32 %v1075_v47, %v1059_v21 }
 0x5d4   : > { %v1080_v49 = vmul.f32 %v1451_v46, %v1076_v48 }
 0x5d6   : > { %v1084_v50 = vadd.f32 %v1452_v43, %v1080_v49 }
 0x5d8   : > { %1366 = vmatmul.msk.f32.vlgmr.msrb.gmra.mxu1 %vm586_vm0, %v1084_v50 }
 0x655   : > { %v1141_v53 = vpop.f32.mrf.mxu1 }
 0x656   : > { %v1142_v54 = vadd.f32 %v1453_v52, %v1141_v53 }
 0x658   : > { %v1144_v55 = vmax.f32 %v1142_v54, 0.0 }
 0x65a   : > { %1371 = vmatmul.msk.f32.vlgmr.msrb.gmra.mxu2 %vm1153_vm13, %v1144_v55 }
 0x6dd   : > { %v1186_v42 = vpop.f32.mrf.mxu2 }
 0x6de   : > { %v1187_v56 = vadd.f32 %v1454_v41, %v1186_v42 }
 0x6e0   : > { %v1189_v57 = vadd.f32 %v1187_v56, %v1084_v50 }
 0x6e2   : > { %v1192_v58 = vsel %vm586_vm0, %v1189_v57, 0.0 }
 0x6e3   : > { %1193 = vadd.xlane.f32.xlu1 %v1192_v58 }
 0x756   : > { %v1194_v59 = vpop.xlane.xlu1 %1193 }
 0x757   : > { %v1195_v60 = vmul.f32 %v1194_v59, %v1861_v19 }
 0x759   : > { %v1196_v61 = vsub.f32 %v1189_v57, %v1195_v60 }
 0x75b   : > { %v1197_v62 = vmul.f32 %v1196_v61, %v1196_v61 }
 0x75d   : > { %v1198_v63 = vsel %vm586_vm0, %v1197_v62, 0.0 }
 0x75e   : > { %1199 = vadd.xlane.f32.xlu0 %v1198_v63 }
 0x7d1   : > { %v1200_v12 = vpop.xlane.xlu0 %1199 }
 0x7d2   : > { %v1201_v0 = vmul.f32 %v1200_v12, %v1861_v19 }
 0x7d4   : > { %v1202_v1 = vadd.f32 1e-05, %v1201_v0 }
 0x7d6   : > { %1469 = vrsqrt.f32 %v1202_v1  ;;  %vm1209_vm3 = vweird.f32 %v1202_v1 }
 0x7dc   : > { %v1470_v2 = vpop.eup %1469 }
 0x7dd   : > { %v1204_v3 = vmul.f32 %v1470_v2, %v1202_v1  ;;  %vm1210_vm2 = vweird.f32 %v1470_v2 }
 0x7de   : > { %vm1211_vm4 = vmor %vm1209_vm3, %vm1210_vm2 }
 0x7df   : > { %v1205_v4 = vmul.f32 %v1470_v2, %v1204_v3 }
 0x7e1   : > { %v1206_v5 = vmul.f32 0.5, %v1205_v4 }
 0x7e3   : > { %v1207_v6 = vsub.f32 1.5, %v1206_v5 }
 0x7e5   : > { %v1208_v7 = vmul.f32 %v1470_v2, %v1207_v6 }
 0x7e7   : > { %v1212_v10 = vsel %vm1211_vm4, %v1470_v2, %v1208_v7 }
 0x7e8   : > { %v1213_v11 = vmul.f32 %v1212_v10, %v1196_v61 }
 0x7ea   : > { %v1217_v14 = vmul.f32 %v1455_v8, %v1213_v11 }
 0x7ec   : > { %v1221_v15 = vadd.f32 %v1456_v13, %v1217_v14 }
 0x7ee   : > { %1222 = vst.msk [vmem:[%s565_s21] sm:$0xff] %vm586_vm0, %v1221_v15 }
 0x7ef   : > { %1498 = shalt.err (!%p1495_p3)
}
 0x7f0   : > { %1376 = dma.vmem_to_hbm [thread:$0]  (%p1678_p5), %s1237_s28, 128, %s1239_s30, %s1224_s18  }
 0x7f1 PF: > { %s2007_s0 = sld [smem:[#allocation7_spill]] }
 0x7f2   : > { %s2008_s19 = sld [smem:[#allocation5_spill]] }
 0x7f7   : > { %p1382_p4 = scmp.ge.s32.totalorder %s2007_s0, 2 }
 0x7f8   : > { %s1250_s2 = sand.u32 1, %s2008_s19  }
 0x7f9   : > { %p1379_p7 = pnand %p1382_p4, %p1682_p6  ;;  %s1251_s22 = scalar_lea.sflag [#allocation3], %s1250_s2 }
 0x7fb   : > { %p1380_p8 = pneg %p1379_p7 }
 0x7fd   : > { %1516 = dma.done.wait (%p1380_p8), %s1251_s22, 128  }
 0x7fe   : > { %1518 = vsyncadd (%p1380_p8), %s1251_s22, 4294967168  ;;  %s2010_s27 = sld [smem:[#allocation8_spill]]  ;;  %s2013_s24 = smov %s1525_s25 }
 0x7ff   : > { %s2011_s20 = sld [smem:[#allocation6_spill]] }
 0x800   : > { %s2012_s26 = sld [smem:[#allocation9_spill]] }
 0x804   : > { %p27_p9 = scmp.ge.s32.totalorder %s2010_s27, 4  }
 0x805   : > { %s2014_s25 = smov %s2011_s20 }
 0x806   :  { %29 = sbr.rel (!%p27_p9) target bundleno = 7 (0x7), region = 132 }
 0x80b   :  { %1257 = vsyncpa [#allocation3], 1 }
 0x80c   :  { %1259 = vsyncpa [#allocation3 + $0x1], 1 }

</bundles_post_ra>
